<compile_context>
chip_gen: v5e
topology: v5e:2x2
jax: 0.10.0
libtpu: 0.0.40
codegen_flags: <defaults>
</compile_context>

<pallas_src>
import jax
import jax.numpy as jnp
import numpy as np
from jax.experimental import pallas as pl
from jax.experimental.pallas import tpu as pltpu


def make_lstm_kernel(T: int, Bp: int, D: int, H: int, O: int, L: int,
                     compute_dtype):
    """Builds the kernel body for static (T, Bp, D, H, O, L)."""

    def kernel(*refs):
        # refs layout:
        #   [0]                x2d        (T*Bp, D)  time-major, batch-padded,
        #                                            already in compute_dtype
        #   [1 .. 3L]          (w_ih (in,4H), w_hh (H,4H), b (1,4H)) per layer
        #                      weights in compute_dtype, bias in f32
        #   [1+3L], [2+3L]     w_lin (H, O) compute_dtype, b_lin (1, O) f32
        #   [3+3L], [4+3L]     outputs: last_h (Bp, H), logits (Bp, O)
        #   [5+3L]             scratch: seq_sc (T*Bp, H) f32 (layer handoff)
        x_ref = refs[0]
        layer_refs = refs[1:1 + 3 * L]
        w_lin_ref = refs[1 + 3 * L]
        b_lin_ref = refs[2 + 3 * L]
        last_h_ref = refs[3 + 3 * L]
        lin_ref = refs[4 + 3 * L]
        seq_sc = refs[5 + 3 * L]

        def mm(a, w):
            # Weights are already compute_dtype; cast LHS once, accumulate f32.
            return jnp.dot(a.astype(compute_dtype), w,
                           preferred_element_type=jnp.float32)

        # Packed-gate activation constants (hoisted; constant across layers).
        # sigmoid(x) = 0.5*tanh(0.5*x) + 0.5 for the i/f/o gates, tanh for g:
        #   act = tanh(gates * scale) * scale + offset
        lane = jax.lax.broadcasted_iota(jnp.int32, (1, 4 * H), 1)
        is_g = (lane >= 2 * H) & (lane < 3 * H)
        gate_scale = jnp.where(is_g, 1.0, 0.5).astype(jnp.float32)   # (1, 4H)
        gate_offset = jnp.where(is_g, 0.0, 0.5).astype(jnp.float32)  # (1, 4H)

        in2d = x_ref[...]                       # (T*Bp, in_dim) compute_dtype
        h_last = None
        for l in range(L):
            w_ih = layer_refs[3 * l + 0][...]   # (in, 4H) compute_dtype
            w_hh = layer_refs[3 * l + 1][...]   # (H,  4H) compute_dtype
            b = layer_refs[3 * l + 2][...]      # (1,  4H) f32

            # Input projection for every timestep in ONE wide MXU matmul with
            # the (b_ih + b_hh) bias folded in -> half the FLOPs leave the
            # serial recurrence.  Kept packed: no per-gate splits.
            xproj = mm(in2d, w_ih) + b          # (T*Bp, 4H) f32

            h = jnp.zeros((Bp, H), jnp.float32)
            c = jnp.zeros((Bp, H), jnp.float32)
            # TODO(synk): hold w_hh resident in the MXU across the time loop
            # via pltpu.matmul_push_rhs / matmul_acc_lhs / matmul_pop to drop
            # the per-step RHS reload from the serial chain.
            # TODO(synk): for large T, replace the unrolled Python loop with
            # lax.fori_loop(unroll=4-8), staging xproj in VMEM scratch and
            # indexing with pl.ds(pl.multiple_of(t*Bp, Bp), Bp).
            for t in range(T):                  # unrolled serial recurrence
                r0 = t * Bp
                # ONE fused recurrent matmul + packed xproj add per step.
                gates = xproj[r0:r0 + Bp, :] + mm(h, w_hh)       # (Bp,4H) f32
                # ONE full-vreg EUP tanh pass; scale/offset on the VPU.
                act = jnp.tanh(gates * gate_scale) * gate_scale + gate_offset
                i_g = act[:, 0 * H:1 * H]
                f_g = act[:, 1 * H:2 * H]
                g_g = act[:, 2 * H:3 * H]
                o_g = act[:, 3 * H:4 * H]
                c = f_g * c + i_g * g_g
                h = o_g * jnp.tanh(c)
                if l + 1 < L:
                    # Stage this layer's output sequence (f32, tile-aligned
                    # 8-row store) for the next layer's big input projection.
                    seq_sc[r0:r0 + Bp, :] = h
            if l + 1 < L:
                in2d = seq_sc[...]              # (T*Bp, H) f32
            h_last = h                          # h at t = T-1 of this layer
            # TODO(synk): for L>=2, wavefront-pipeline layer l+1 one step
            # behind layer l to overlap the two serial MXU+EUP chains.

        last_h_ref[...] = h_last.astype(last_h_ref.dtype)
        # Tiny Linear head kept in-kernel: one-time (Bp,H)@(H,O) + small store.
        lin_ref[...] = (mm(h_last, w_lin_ref[...])
                        + b_lin_ref[...]).astype(lin_ref.dtype)

    return kernel


def lstms_forward(x, layer_params, w_lin, b_lin, *,
                  compute_dtype=jnp.float32):
    """x: (B, T, D) batch-first.  Returns (last_hidden (B,H), logits (B,O)).

    compute_dtype=bf16 (f32 accumulate) is a valid fast path on v5e/v6e/v7x.
    """
    B, T, D = x.shape
    L = len(layer_params)
    H = layer_params[0][1].shape[0]
    O = w_lin.shape[1]
    Bp = ((B + 7) // 8) * 8                     # pad batch to full sublanes

    x_tm = jnp.transpose(x, (1, 0, 2))                      # (T, B, D)
    x_tm = jnp.pad(x_tm, ((0, 0), (0, Bp - B), (0, 0)))     # (T, Bp, D)
    x2d = x_tm.reshape(T * Bp, D).astype(compute_dtype)     # row = t*Bp + b

    # Pre-cast matmul operands in the wrapper (halves DMA bytes for bf16;
    # no bulk in-kernel casts).  Biases stay f32 (added post-accumulation).
    flat_inputs = [x2d]
    for (w_ih, w_hh, b) in layer_params:
        flat_inputs += [w_ih.astype(compute_dtype),
                        w_hh.astype(compute_dtype),
                        b.reshape(1, 4 * H).astype(jnp.float32)]
    flat_inputs += [w_lin.astype(compute_dtype),
                    b_lin.reshape(1, O).astype(jnp.float32)]

    kernel = make_lstm_kernel(T, Bp, D, H, O, L, compute_dtype)

    # Explicit VMEM budget (keeps the same kernel inside v7x's smaller
    # scoped-VMEM default); 4x headroom over the static estimate.
    est = sum(int(np.prod(a.shape)) * a.dtype.itemsize for a in flat_inputs)
    est += T * Bp * H * 4                        # seq_sc scratch (f32)
    est += T * Bp * 4 * H * 4                    # xproj (f32, reused per layer)
    est += (Bp * H + Bp * O) * 4                 # outputs
    vmem_limit = int(min(64 * 1024 * 1024, max(16 * 1024 * 1024, 4 * est)))

    last_h, logits = pl.pallas_call(
        kernel,
        out_shape=(jax.ShapeDtypeStruct((Bp, H), jnp.float32),
                   jax.ShapeDtypeStruct((Bp, O), jnp.float32)),
        in_specs=[pl.BlockSpec(memory_space=pltpu.MemorySpace.VMEM)
                  for _ in flat_inputs],
        out_specs=(pl.BlockSpec(memory_space=pltpu.MemorySpace.VMEM),
                   pl.BlockSpec(memory_space=pltpu.MemorySpace.VMEM)),
        scratch_shapes=[pltpu.VMEM((T * Bp, H), jnp.float32)],
        compiler_params=pltpu.CompilerParams(vmem_limit_bytes=vmem_limit),
    )(*flat_inputs)
    # TODO(synk): for large B on v7x, shard the padded batch over the two
    # TensorCores (leading "parallel" grid axis); time is inherently serial.
    return last_h[:B], logits[:B]


def lstms_reference(x, layer_params, w_lin, b_lin):
    """Pure-JAX reference mirroring torch.nn.LSTM + nn.Linear."""
    B, T, D = x.shape
    L = len(layer_params)
    H = layer_params[0][1].shape[0]
    hs = [jnp.zeros((B, H), jnp.float32) for _ in range(L)]
    cs = [jnp.zeros((B, H), jnp.float32) for _ in range(L)]
    for t in range(T):
        inp = x[:, t, :]
        for l, (w_ih, w_hh, b) in enumerate(layer_params):
            gates = inp @ w_ih + hs[l] @ w_hh + b
            i_g = jax.nn.sigmoid(gates[:, 0 * H:1 * H])
            f_g = jax.nn.sigmoid(gates[:, 1 * H:2 * H])
            g_g = jnp.tanh(gates[:, 2 * H:3 * H])
            o_g = jax.nn.sigmoid(gates[:, 3 * H:4 * H])
            cs[l] = f_g * cs[l] + i_g * g_g
            hs[l] = o_g * jnp.tanh(cs[l])
            inp = hs[l]
    last = hs[-1]
    return last, last @ w_lin + b_lin.reshape(1, -1)


if __name__ == "__main__":
    # Module config: LSTMs(input_dim=16, hidden_dim=32, out_dim=8, layers=2)
    B, T, D, H, O, L = 2, 8, 16, 32, 8, 2

    key = jax.random.PRNGKey(0)
    keys = jax.random.split(key, 2 + 6 * L)
    k = 1.0 / np.sqrt(H)  # PyTorch default uniform(-1/sqrt(H), 1/sqrt(H))

    x = jax.random.normal(keys[0], (B, T, D), dtype=jnp.float32)

    layer_params = []
    ki = 1
    for l in range(L):
        in_dim = D if l == 0 else H
        # Stored pre-transposed: (in_dim, 4H) / (H, 4H); combined bias (4H,)
        w_ih = jax.random.uniform(keys[ki + 0], (in_dim, 4 * H), jnp.float32, -k, k)
        w_hh = jax.random.uniform(keys[ki + 1], (H, 4 * H), jnp.float32, -k, k)
        b_ih = jax.random.uniform(keys[ki + 2], (4 * H,), jnp.float32, -k, k)
        b_hh = jax.random.uniform(keys[ki + 3], (4 * H,), jnp.float32, -k, k)
        layer_params.append((w_ih, w_hh, b_ih + b_hh))
        ki += 4

    kl = 1.0 / np.sqrt(H)
    w_lin = jax.random.uniform(keys[ki + 0], (H, O), jnp.float32, -kl, kl)
    b_lin = jax.random.uniform(keys[ki + 1], (O,), jnp.float32, -kl, kl)

    ref_last_h, ref_logits = lstms_reference(x, layer_params, w_lin, b_lin)

    # f32 operand path.  Tolerance is slightly relaxed vs bit-exact because
    # the kernel lowers sigmoid as 0.5*tanh(0.5*x)+0.5 (single EUP pass).
    last_h, logits = lstms_forward(x, layer_params, w_lin, b_lin)
    jax.block_until_ready((last_h, logits))
    np.testing.assert_allclose(np.asarray(last_h), np.asarray(ref_last_h),
                               rtol=1e-4, atol=1e-4)
    np.testing.assert_allclose(np.asarray(logits), np.asarray(ref_logits),
                               rtol=1e-4, atol=1e-4)
    assert last_h.shape == (B, H) and logits.shape == (B, O)

    # bf16-operand / f32-accumulate path (valid fast path on v5e/v6e/v7x).
    last_h_bf, logits_bf = lstms_forward(x, layer_params, w_lin, b_lin,
                                         compute_dtype=jnp.bfloat16)
    jax.block_until_ready((last_h_bf, logits_bf))
    np.testing.assert_allclose(np.asarray(last_h_bf), np.asarray(ref_last_h),
                               rtol=5e-2, atol=5e-2)
    np.testing.assert_allclose(np.asarray(logits_bf), np.asarray(ref_logits),
                               rtol=5e-2, atol=5e-2)

    print("KERNEL_OK")
</pallas_src>

<mosaic_0001>
module attributes {stable_mosaic.version = 11 : i64} {
  func.func @kernel(%arg0: memref<64x16xf32, #tpu.memory_space<vmem>>, %arg1: memref<16x128xf32, #tpu.memory_space<vmem>>, %arg2: memref<32x128xf32, #tpu.memory_space<vmem>>, %arg3: memref<1x128xf32, #tpu.memory_space<vmem>>, %arg4: memref<32x128xf32, #tpu.memory_space<vmem>>, %arg5: memref<32x128xf32, #tpu.memory_space<vmem>>, %arg6: memref<1x128xf32, #tpu.memory_space<vmem>>, %arg7: memref<32x8xf32, #tpu.memory_space<vmem>>, %arg8: memref<1x8xf32, #tpu.memory_space<vmem>>, %arg9: memref<8x32xf32, #tpu.memory_space<vmem>>, %arg10: memref<8x8xf32, #tpu.memory_space<vmem>>, %arg11: memref<64x32xf32, #tpu.memory_space<vmem>>) attributes {dimension_semantics = [], scalar_prefetch = 0 : i64, scratch_operands = 1 : i64, tpu.core_type = #tpu.core_type<tc>} {
    %0 = tpu.iota {dimensions = array<i32: 1>} : vector<1x128xi32>
    %c64_i32 = arith.constant 64 : i32
    %1 = vector.broadcast %c64_i32 : i32 to vector<1x128xi32>
    %2 = arith.cmpi sge, %0, %1 : vector<1x128xi32>
    %c96_i32 = arith.constant 96 : i32
    %3 = vector.broadcast %c96_i32 : i32 to vector<1x128xi32>
    %4 = arith.cmpi slt, %0, %3 : vector<1x128xi32>
    %5 = arith.andi %2, %4 : vector<1x128xi1>
    %cst = arith.constant 1.000000e+00 : f32
    %cst_0 = arith.constant 5.000000e-01 : f32
    %6 = vector.broadcast %cst : f32 to vector<1x128xf32>
    %7 = vector.broadcast %cst_0 : f32 to vector<1x128xf32>
    %8 = arith.select %5, %6, %7 : vector<1x128xi1>, vector<1x128xf32>
    %cst_1 = arith.constant 0.000000e+00 : f32
    %cst_2 = arith.constant 5.000000e-01 : f32
    %9 = vector.broadcast %cst_1 : f32 to vector<1x128xf32>
    %10 = vector.broadcast %cst_2 : f32 to vector<1x128xf32>
    %11 = arith.select %5, %9, %10 : vector<1x128xi1>, vector<1x128xf32>
    %c0 = arith.constant 0 : index
    %c0_3 = arith.constant 0 : index
    %12 = vector.load %arg0[%c0, %c0_3] : memref<64x16xf32, #tpu.memory_space<vmem>>, vector<64x16xf32>
    %c0_4 = arith.constant 0 : index
    %c0_5 = arith.constant 0 : index
    %13 = vector.load %arg1[%c0_4, %c0_5] : memref<16x128xf32, #tpu.memory_space<vmem>>, vector<16x128xf32>
    %c0_6 = arith.constant 0 : index
    %c0_7 = arith.constant 0 : index
    %14 = vector.load %arg2[%c0_6, %c0_7] : memref<32x128xf32, #tpu.memory_space<vmem>>, vector<32x128xf32>
    %c0_8 = arith.constant 0 : index
    %c0_9 = arith.constant 0 : index
    %15 = vector.load %arg3[%c0_8, %c0_9] : memref<1x128xf32, #tpu.memory_space<vmem>>, vector<1x128xf32>
    %cst_10 = arith.constant dense<0.000000e+00> : vector<64x128xf32>
    %16 = tpu.matmul %12, %13, %cst_10 {dimension_numbers = #tpu.dot_dimension_numbers<[1], [0], [0], [1], [0, 0, 1, 1], [], []>} : vector<64x16xf32>, vector<16x128xf32>, vector<64x128xf32> -> vector<64x128xf32>
    %17 = vector.broadcast %15 : vector<1x128xf32> to vector<64x128xf32>
    %18 = arith.addf %16, %17 : vector<64x128xf32>
    %cst_11 = arith.constant 0.000000e+00 : f32
    %19 = vector.broadcast %cst_11 : f32 to vector<8x32xf32>
    %cst_12 = arith.constant 0.000000e+00 : f32
    %20 = vector.broadcast %cst_12 : f32 to vector<8x32xf32>
    %21 = vector.extract_strided_slice %18 {offsets = [0, 0], sizes = [8, 128], strides = [1, 1]} : vector<64x128xf32> to vector<8x128xf32>
    %cst_13 = arith.constant dense<0.000000e+00> : vector<8x128xf32>
    %22 = tpu.matmul %19, %14, %cst_13 {dimension_numbers = #tpu.dot_dimension_numbers<[1], [0], [0], [1], [0, 0, 1, 1], [], []>} : vector<8x32xf32>, vector<32x128xf32>, vector<8x128xf32> -> vector<8x128xf32>
    %23 = arith.addf %21, %22 : vector<8x128xf32>
    %24 = vector.broadcast %8 : vector<1x128xf32> to vector<8x128xf32>
    %25 = arith.mulf %23, %24 : vector<8x128xf32>
    %26 = math.tanh %25 : vector<8x128xf32>
    %27 = vector.broadcast %8 : vector<1x128xf32> to vector<8x128xf32>
    %28 = arith.mulf %26, %27 : vector<8x128xf32>
    %29 = vector.broadcast %11 : vector<1x128xf32> to vector<8x128xf32>
    %30 = arith.addf %28, %29 : vector<8x128xf32>
    %31 = vector.extract_strided_slice %30 {offsets = [0, 0], sizes = [8, 32], strides = [1, 1]} : vector<8x128xf32> to vector<8x32xf32>
    %32 = vector.extract_strided_slice %30 {offsets = [0, 32], sizes = [8, 32], strides = [1, 1]} : vector<8x128xf32> to vector<8x32xf32>
    %33 = vector.extract_strided_slice %30 {offsets = [0, 64], sizes = [8, 32], strides = [1, 1]} : vector<8x128xf32> to vector<8x32xf32>
    %34 = vector.extract_strided_slice %30 {offsets = [0, 96], sizes = [8, 32], strides = [1, 1]} : vector<8x128xf32> to vector<8x32xf32>
    %35 = arith.mulf %32, %20 : vector<8x32xf32>
    %36 = arith.mulf %31, %33 : vector<8x32xf32>
    %37 = arith.addf %35, %36 : vector<8x32xf32>
    %38 = math.tanh %37 : vector<8x32xf32>
    %39 = arith.mulf %34, %38 : vector<8x32xf32>
    %c0_14 = arith.constant 0 : index
    %c0_15 = arith.constant 0 : index
    %40 = vector.load %arg11[%c0_14, %c0_15] : memref<64x32xf32, #tpu.memory_space<vmem>>, vector<8x32xf32>
    tpu.vector_store %arg11[%c0_14, %c0_15], %39 {strides = array<i32>} : memref<64x32xf32, #tpu.memory_space<vmem>>, vector<8x32xf32>,
    %41 = vector.extract_strided_slice %18 {offsets = [8, 0], sizes = [8, 128], strides = [1, 1]} : vector<64x128xf32> to vector<8x128xf32>
    %cst_16 = arith.constant dense<0.000000e+00> : vector<8x128xf32>
    %42 = tpu.matmul %39, %14, %cst_16 {dimension_numbers = #tpu.dot_dimension_numbers<[1], [0], [0], [1], [0, 0, 1, 1], [], []>} : vector<8x32xf32>, vector<32x128xf32>, vector<8x128xf32> -> vector<8x128xf32>
    %43 = arith.addf %41, %42 : vector<8x128xf32>
    %44 = vector.broadcast %8 : vector<1x128xf32> to vector<8x128xf32>
    %45 = arith.mulf %43, %44 : vector<8x128xf32>
    %46 = math.tanh %45 : vector<8x128xf32>
    %47 = vector.broadcast %8 : vector<1x128xf32> to vector<8x128xf32>
    %48 = arith.mulf %46, %47 : vector<8x128xf32>
    %49 = vector.broadcast %11 : vector<1x128xf32> to vector<8x128xf32>
    %50 = arith.addf %48, %49 : vector<8x128xf32>
    %51 = vector.extract_strided_slice %50 {offsets = [0, 0], sizes = [8, 32], strides = [1, 1]} : vector<8x128xf32> to vector<8x32xf32>
    %52 = vector.extract_strided_slice %50 {offsets = [0, 32], sizes = [8, 32], strides = [1, 1]} : vector<8x128xf32> to vector<8x32xf32>
    %53 = vector.extract_strided_slice %50 {offsets = [0, 64], sizes = [8, 32], strides = [1, 1]} : vector<8x128xf32> to vector<8x32xf32>
    %54 = vector.extract_strided_slice %50 {offsets = [0, 96], sizes = [8, 32], strides = [1, 1]} : vector<8x128xf32> to vector<8x32xf32>
    %55 = arith.mulf %52, %37 : vector<8x32xf32>
    %56 = arith.mulf %51, %53 : vector<8x32xf32>
    %57 = arith.addf %55, %56 : vector<8x32xf32>
    %58 = math.tanh %57 : vector<8x32xf32>
    %59 = arith.mulf %54, %58 : vector<8x32xf32>
    %c8 = arith.constant 8 : index
    %c0_17 = arith.constant 0 : index
    %60 = vector.load %arg11[%c8, %c0_17] : memref<64x32xf32, #tpu.memory_space<vmem>>, vector<8x32xf32>
    tpu.vector_store %arg11[%c8, %c0_17], %59 {strides = array<i32>} : memref<64x32xf32, #tpu.memory_space<vmem>>, vector<8x32xf32>,
    %61 = vector.extract_strided_slice %18 {offsets = [16, 0], sizes = [8, 128], strides = [1, 1]} : vector<64x128xf32> to vector<8x128xf32>
    %cst_18 = arith.constant dense<0.000000e+00> : vector<8x128xf32>
    %62 = tpu.matmul %59, %14, %cst_18 {dimension_numbers = #tpu.dot_dimension_numbers<[1], [0], [0], [1], [0, 0, 1, 1], [], []>} : vector<8x32xf32>, vector<32x128xf32>, vector<8x128xf32> -> vector<8x128xf32>
    %63 = arith.addf %61, %62 : vector<8x128xf32>
    %64 = vector.broadcast %8 : vector<1x128xf32> to vector<8x128xf32>
    %65 = arith.mulf %63, %64 : vector<8x128xf32>
    %66 = math.tanh %65 : vector<8x128xf32>
    %67 = vector.broadcast %8 : vector<1x128xf32> to vector<8x128xf32>
    %68 = arith.mulf %66, %67 : vector<8x128xf32>
    %69 = vector.broadcast %11 : vector<1x128xf32> to vector<8x128xf32>
    %70 = arith.addf %68, %69 : vector<8x128xf32>
    %71 = vector.extract_strided_slice %70 {offsets = [0, 0], sizes = [8, 32], strides = [1, 1]} : vector<8x128xf32> to vector<8x32xf32>
    %72 = vector.extract_strided_slice %70 {offsets = [0, 32], sizes = [8, 32], strides = [1, 1]} : vector<8x128xf32> to vector<8x32xf32>
    %73 = vector.extract_strided_slice %70 {offsets = [0, 64], sizes = [8, 32], strides = [1, 1]} : vector<8x128xf32> to vector<8x32xf32>
    %74 = vector.extract_strided_slice %70 {offsets = [0, 96], sizes = [8, 32], strides = [1, 1]} : vector<8x128xf32> to vector<8x32xf32>
    %75 = arith.mulf %72, %57 : vector<8x32xf32>
    %76 = arith.mulf %71, %73 : vector<8x32xf32>
    %77 = arith.addf %75, %76 : vector<8x32xf32>
    %78 = math.tanh %77 : vector<8x32xf32>
    %79 = arith.mulf %74, %78 : vector<8x32xf32>
    %c16 = arith.constant 16 : index
    %c0_19 = arith.constant 0 : index
    %80 = vector.load %arg11[%c16, %c0_19] : memref<64x32xf32, #tpu.memory_space<vmem>>, vector<8x32xf32>
    tpu.vector_store %arg11[%c16, %c0_19], %79 {strides = array<i32>} : memref<64x32xf32, #tpu.memory_space<vmem>>, vector<8x32xf32>,
    %81 = vector.extract_strided_slice %18 {offsets = [24, 0], sizes = [8, 128], strides = [1, 1]} : vector<64x128xf32> to vector<8x128xf32>
    %cst_20 = arith.constant dense<0.000000e+00> : vector<8x128xf32>
    %82 = tpu.matmul %79, %14, %cst_20 {dimension_numbers = #tpu.dot_dimension_numbers<[1], [0], [0], [1], [0, 0, 1, 1], [], []>} : vector<8x32xf32>, vector<32x128xf32>, vector<8x128xf32> -> vector<8x128xf32>
    %83 = arith.addf %81, %82 : vector<8x128xf32>
    %84 = vector.broadcast %8 : vector<1x128xf32> to vector<8x128xf32>
    %85 = arith.mulf %83, %84 : vector<8x128xf32>
    %86 = math.tanh %85 : vector<8x128xf32>
    %87 = vector.broadcast %8 : vector<1x128xf32> to vector<8x128xf32>
    %88 = arith.mulf %86, %87 : vector<8x128xf32>
    %89 = vector.broadcast %11 : vector<1x128xf32> to vector<8x128xf32>
    %90 = arith.addf %88, %89 : vector<8x128xf32>
    %91 = vector.extract_strided_slice %90 {offsets = [0, 0], sizes = [8, 32], strides = [1, 1]} : vector<8x128xf32> to vector<8x32xf32>
    %92 = vector.extract_strided_slice %90 {offsets = [0, 32], sizes = [8, 32], strides = [1, 1]} : vector<8x128xf32> to vector<8x32xf32>
    %93 = vector.extract_strided_slice %90 {offsets = [0, 64], sizes = [8, 32], strides = [1, 1]} : vector<8x128xf32> to vector<8x32xf32>
    %94 = vector.extract_strided_slice %90 {offsets = [0, 96], sizes = [8, 32], strides = [1, 1]} : vector<8x128xf32> to vector<8x32xf32>
    %95 = arith.mulf %92, %77 : vector<8x32xf32>
    %96 = arith.mulf %91, %93 : vector<8x32xf32>
    %97 = arith.addf %95, %96 : vector<8x32xf32>
    %98 = math.tanh %97 : vector<8x32xf32>
    %99 = arith.mulf %94, %98 : vector<8x32xf32>
    %c24 = arith.constant 24 : index
    %c0_21 = arith.constant 0 : index
    %100 = vector.load %arg11[%c24, %c0_21] : memref<64x32xf32, #tpu.memory_space<vmem>>, vector<8x32xf32>
    tpu.vector_store %arg11[%c24, %c0_21], %99 {strides = array<i32>} : memref<64x32xf32, #tpu.memory_space<vmem>>, vector<8x32xf32>,
    %101 = vector.extract_strided_slice %18 {offsets = [32, 0], sizes = [8, 128], strides = [1, 1]} : vector<64x128xf32> to vector<8x128xf32>
    %cst_22 = arith.constant dense<0.000000e+00> : vector<8x128xf32>
    %102 = tpu.matmul %99, %14, %cst_22 {dimension_numbers = #tpu.dot_dimension_numbers<[1], [0], [0], [1], [0, 0, 1, 1], [], []>} : vector<8x32xf32>, vector<32x128xf32>, vector<8x128xf32> -> vector<8x128xf32>
    %103 = arith.addf %101, %102 : vector<8x128xf32>
    %104 = vector.broadcast %8 : vector<1x128xf32> to vector<8x128xf32>
    %105 = arith.mulf %103, %104 : vector<8x128xf32>
    %106 = math.tanh %105 : vector<8x128xf32>
    %107 = vector.broadcast %8 : vector<1x128xf32> to vector<8x128xf32>
    %108 = arith.mulf %106, %107 : vector<8x128xf32>
    %109 = vector.broadcast %11 : vector<1x128xf32> to vector<8x128xf32>
    %110 = arith.addf %108, %109 : vector<8x128xf32>
    %111 = vector.extract_strided_slice %110 {offsets = [0, 0], sizes = [8, 32], strides = [1, 1]} : vector<8x128xf32> to vector<8x32xf32>
    %112 = vector.extract_strided_slice %110 {offsets = [0, 32], sizes = [8, 32], strides = [1, 1]} : vector<8x128xf32> to vector<8x32xf32>
    %113 = vector.extract_strided_slice %110 {offsets = [0, 64], sizes = [8, 32], strides = [1, 1]} : vector<8x128xf32> to vector<8x32xf32>
    %114 = vector.extract_strided_slice %110 {offsets = [0, 96], sizes = [8, 32], strides = [1, 1]} : vector<8x128xf32> to vector<8x32xf32>
    %115 = arith.mulf %112, %97 : vector<8x32xf32>
    %116 = arith.mulf %111, %113 : vector<8x32xf32>
    %117 = arith.addf %115, %116 : vector<8x32xf32>
    %118 = math.tanh %117 : vector<8x32xf32>
    %119 = arith.mulf %114, %118 : vector<8x32xf32>
    %c32 = arith.constant 32 : index
    %c0_23 = arith.constant 0 : index
    %120 = vector.load %arg11[%c32, %c0_23] : memref<64x32xf32, #tpu.memory_space<vmem>>, vector<8x32xf32>
    tpu.vector_store %arg11[%c32, %c0_23], %119 {strides = array<i32>} : memref<64x32xf32, #tpu.memory_space<vmem>>, vector<8x32xf32>,
    %121 = vector.extract_strided_slice %18 {offsets = [40, 0], sizes = [8, 128], strides = [1, 1]} : vector<64x128xf32> to vector<8x128xf32>
    %cst_24 = arith.constant dense<0.000000e+00> : vector<8x128xf32>
    %122 = tpu.matmul %119, %14, %cst_24 {dimension_numbers = #tpu.dot_dimension_numbers<[1], [0], [0], [1], [0, 0, 1, 1], [], []>} : vector<8x32xf32>, vector<32x128xf32>, vector<8x128xf32> -> vector<8x128xf32>
    %123 = arith.addf %121, %122 : vector<8x128xf32>
    %124 = vector.broadcast %8 : vector<1x128xf32> to vector<8x128xf32>
    %125 = arith.mulf %123, %124 : vector<8x128xf32>
    %126 = math.tanh %125 : vector<8x128xf32>
    %127 = vector.broadcast %8 : vector<1x128xf32> to vector<8x128xf32>
    %128 = arith.mulf %126, %127 : vector<8x128xf32>
    %129 = vector.broadcast %11 : vector<1x128xf32> to vector<8x128xf32>
    %130 = arith.addf %128, %129 : vector<8x128xf32>
    %131 = vector.extract_strided_slice %130 {offsets = [0, 0], sizes = [8, 32], strides = [1, 1]} : vector<8x128xf32> to vector<8x32xf32>
    %132 = vector.extract_strided_slice %130 {offsets = [0, 32], sizes = [8, 32], strides = [1, 1]} : vector<8x128xf32> to vector<8x32xf32>
    %133 = vector.extract_strided_slice %130 {offsets = [0, 64], sizes = [8, 32], strides = [1, 1]} : vector<8x128xf32> to vector<8x32xf32>
    %134 = vector.extract_strided_slice %130 {offsets = [0, 96], sizes = [8, 32], strides = [1, 1]} : vector<8x128xf32> to vector<8x32xf32>
    %135 = arith.mulf %132, %117 : vector<8x32xf32>
    %136 = arith.mulf %131, %133 : vector<8x32xf32>
    %137 = arith.addf %135, %136 : vector<8x32xf32>
    %138 = math.tanh %137 : vector<8x32xf32>
    %139 = arith.mulf %134, %138 : vector<8x32xf32>
    %c40 = arith.constant 40 : index
    %c0_25 = arith.constant 0 : index
    %140 = vector.load %arg11[%c40, %c0_25] : memref<64x32xf32, #tpu.memory_space<vmem>>, vector<8x32xf32>
    tpu.vector_store %arg11[%c40, %c0_25], %139 {strides = array<i32>} : memref<64x32xf32, #tpu.memory_space<vmem>>, vector<8x32xf32>,
    %141 = vector.extract_strided_slice %18 {offsets = [48, 0], sizes = [8, 128], strides = [1, 1]} : vector<64x128xf32> to vector<8x128xf32>
    %cst_26 = arith.constant dense<0.000000e+00> : vector<8x128xf32>
    %142 = tpu.matmul %139, %14, %cst_26 {dimension_numbers = #tpu.dot_dimension_numbers<[1], [0], [0], [1], [0, 0, 1, 1], [], []>} : vector<8x32xf32>, vector<32x128xf32>, vector<8x128xf32> -> vector<8x128xf32>
    %143 = arith.addf %141, %142 : vector<8x128xf32>
    %144 = vector.broadcast %8 : vector<1x128xf32> to vector<8x128xf32>
    %145 = arith.mulf %143, %144 : vector<8x128xf32>
    %146 = math.tanh %145 : vector<8x128xf32>
    %147 = vector.broadcast %8 : vector<1x128xf32> to vector<8x128xf32>
    %148 = arith.mulf %146, %147 : vector<8x128xf32>
    %149 = vector.broadcast %11 : vector<1x128xf32> to vector<8x128xf32>
    %150 = arith.addf %148, %149 : vector<8x128xf32>
    %151 = vector.extract_strided_slice %150 {offsets = [0, 0], sizes = [8, 32], strides = [1, 1]} : vector<8x128xf32> to vector<8x32xf32>
    %152 = vector.extract_strided_slice %150 {offsets = [0, 32], sizes = [8, 32], strides = [1, 1]} : vector<8x128xf32> to vector<8x32xf32>
    %153 = vector.extract_strided_slice %150 {offsets = [0, 64], sizes = [8, 32], strides = [1, 1]} : vector<8x128xf32> to vector<8x32xf32>
    %154 = vector.extract_strided_slice %150 {offsets = [0, 96], sizes = [8, 32], strides = [1, 1]} : vector<8x128xf32> to vector<8x32xf32>
    %155 = arith.mulf %152, %137 : vector<8x32xf32>
    %156 = arith.mulf %151, %153 : vector<8x32xf32>
    %157 = arith.addf %155, %156 : vector<8x32xf32>
    %158 = math.tanh %157 : vector<8x32xf32>
    %159 = arith.mulf %154, %158 : vector<8x32xf32>
    %c48 = arith.constant 48 : index
    %c0_27 = arith.constant 0 : index
    %160 = vector.load %arg11[%c48, %c0_27] : memref<64x32xf32, #tpu.memory_space<vmem>>, vector<8x32xf32>
    tpu.vector_store %arg11[%c48, %c0_27], %159 {strides = array<i32>} : memref<64x32xf32, #tpu.memory_space<vmem>>, vector<8x32xf32>,
    %161 = vector.extract_strided_slice %18 {offsets = [56, 0], sizes = [8, 128], strides = [1, 1]} : vector<64x128xf32> to vector<8x128xf32>
    %cst_28 = arith.constant dense<0.000000e+00> : vector<8x128xf32>
    %162 = tpu.matmul %159, %14, %cst_28 {dimension_numbers = #tpu.dot_dimension_numbers<[1], [0], [0], [1], [0, 0, 1, 1], [], []>} : vector<8x32xf32>, vector<32x128xf32>, vector<8x128xf32> -> vector<8x128xf32>
    %163 = arith.addf %161, %162 : vector<8x128xf32>
    %164 = vector.broadcast %8 : vector<1x128xf32> to vector<8x128xf32>
    %165 = arith.mulf %163, %164 : vector<8x128xf32>
    %166 = math.tanh %165 : vector<8x128xf32>
    %167 = vector.broadcast %8 : vector<1x128xf32> to vector<8x128xf32>
    %168 = arith.mulf %166, %167 : vector<8x128xf32>
    %169 = vector.broadcast %11 : vector<1x128xf32> to vector<8x128xf32>
    %170 = arith.addf %168, %169 : vector<8x128xf32>
    %171 = vector.extract_strided_slice %170 {offsets = [0, 0], sizes = [8, 32], strides = [1, 1]} : vector<8x128xf32> to vector<8x32xf32>
    %172 = vector.extract_strided_slice %170 {offsets = [0, 32], sizes = [8, 32], strides = [1, 1]} : vector<8x128xf32> to vector<8x32xf32>
    %173 = vector.extract_strided_slice %170 {offsets = [0, 64], sizes = [8, 32], strides = [1, 1]} : vector<8x128xf32> to vector<8x32xf32>
    %174 = vector.extract_strided_slice %170 {offsets = [0, 96], sizes = [8, 32], strides = [1, 1]} : vector<8x128xf32> to vector<8x32xf32>
    %175 = arith.mulf %172, %157 : vector<8x32xf32>
    %176 = arith.mulf %171, %173 : vector<8x32xf32>
    %177 = arith.addf %175, %176 : vector<8x32xf32>
    %178 = math.tanh %177 : vector<8x32xf32>
    %179 = arith.mulf %174, %178 : vector<8x32xf32>
    %c56 = arith.constant 56 : index
    %c0_29 = arith.constant 0 : index
    %180 = vector.load %arg11[%c56, %c0_29] : memref<64x32xf32, #tpu.memory_space<vmem>>, vector<8x32xf32>
    tpu.vector_store %arg11[%c56, %c0_29], %179 {strides = array<i32>} : memref<64x32xf32, #tpu.memory_space<vmem>>, vector<8x32xf32>,
    %c0_30 = arith.constant 0 : index
    %c0_31 = arith.constant 0 : index
    %181 = vector.load %arg11[%c0_30, %c0_31] : memref<64x32xf32, #tpu.memory_space<vmem>>, vector<64x32xf32>
    %c0_32 = arith.constant 0 : index
    %c0_33 = arith.constant 0 : index
    %182 = vector.load %arg4[%c0_32, %c0_33] : memref<32x128xf32, #tpu.memory_space<vmem>>, vector<32x128xf32>
    %c0_34 = arith.constant 0 : index
    %c0_35 = arith.constant 0 : index
    %183 = vector.load %arg5[%c0_34, %c0_35] : memref<32x128xf32, #tpu.memory_space<vmem>>, vector<32x128xf32>
    %c0_36 = arith.constant 0 : index
    %c0_37 = arith.constant 0 : index
    %184 = vector.load %arg6[%c0_36, %c0_37] : memref<1x128xf32, #tpu.memory_space<vmem>>, vector<1x128xf32>
    %cst_38 = arith.constant dense<0.000000e+00> : vector<64x128xf32>
    %185 = tpu.matmul %181, %182, %cst_38 {dimension_numbers = #tpu.dot_dimension_numbers<[1], [0], [0], [1], [0, 0, 1, 1], [], []>} : vector<64x32xf32>, vector<32x128xf32>, vector<64x128xf32> -> vector<64x128xf32>
    %186 = vector.broadcast %184 : vector<1x128xf32> to vector<64x128xf32>
    %187 = arith.addf %185, %186 : vector<64x128xf32>
    %cst_39 = arith.constant 0.000000e+00 : f32
    %188 = vector.broadcast %cst_39 : f32 to vector<8x32xf32>
    %cst_40 = arith.constant 0.000000e+00 : f32
    %189 = vector.broadcast %cst_40 : f32 to vector<8x32xf32>
    %190 = vector.extract_strided_slice %187 {offsets = [0, 0], sizes = [8, 128], strides = [1, 1]} : vector<64x128xf32> to vector<8x128xf32>
    %cst_41 = arith.constant dense<0.000000e+00> : vector<8x128xf32>
    %191 = tpu.matmul %188, %183, %cst_41 {dimension_numbers = #tpu.dot_dimension_numbers<[1], [0], [0], [1], [0, 0, 1, 1], [], []>} : vector<8x32xf32>, vector<32x128xf32>, vector<8x128xf32> -> vector<8x128xf32>
    %192 = arith.addf %190, %191 : vector<8x128xf32>
    %193 = vector.broadcast %8 : vector<1x128xf32> to vector<8x128xf32>
    %194 = arith.mulf %192, %193 : vector<8x128xf32>
    %195 = math.tanh %194 : vector<8x128xf32>
    %196 = vector.broadcast %8 : vector<1x128xf32> to vector<8x128xf32>
    %197 = arith.mulf %195, %196 : vector<8x128xf32>
    %198 = vector.broadcast %11 : vector<1x128xf32> to vector<8x128xf32>
    %199 = arith.addf %197, %198 : vector<8x128xf32>
    %200 = vector.extract_strided_slice %199 {offsets = [0, 0], sizes = [8, 32], strides = [1, 1]} : vector<8x128xf32> to vector<8x32xf32>
    %201 = vector.extract_strided_slice %199 {offsets = [0, 32], sizes = [8, 32], strides = [1, 1]} : vector<8x128xf32> to vector<8x32xf32>
    %202 = vector.extract_strided_slice %199 {offsets = [0, 64], sizes = [8, 32], strides = [1, 1]} : vector<8x128xf32> to vector<8x32xf32>
    %203 = vector.extract_strided_slice %199 {offsets = [0, 96], sizes = [8, 32], strides = [1, 1]} : vector<8x128xf32> to vector<8x32xf32>
    %204 = arith.mulf %201, %189 : vector<8x32xf32>
    %205 = arith.mulf %200, %202 : vector<8x32xf32>
    %206 = arith.addf %204, %205 : vector<8x32xf32>
    %207 = math.tanh %206 : vector<8x32xf32>
    %208 = arith.mulf %203, %207 : vector<8x32xf32>
    %209 = vector.extract_strided_slice %187 {offsets = [8, 0], sizes = [8, 128], strides = [1, 1]} : vector<64x128xf32> to vector<8x128xf32>
    %cst_42 = arith.constant dense<0.000000e+00> : vector<8x128xf32>
    %210 = tpu.matmul %208, %183, %cst_42 {dimension_numbers = #tpu.dot_dimension_numbers<[1], [0], [0], [1], [0, 0, 1, 1], [], []>} : vector<8x32xf32>, vector<32x128xf32>, vector<8x128xf32> -> vector<8x128xf32>
    %211 = arith.addf %209, %210 : vector<8x128xf32>
    %212 = vector.broadcast %8 : vector<1x128xf32> to vector<8x128xf32>
    %213 = arith.mulf %211, %212 : vector<8x128xf32>
    %214 = math.tanh %213 : vector<8x128xf32>
    %215 = vector.broadcast %8 : vector<1x128xf32> to vector<8x128xf32>
    %216 = arith.mulf %214, %215 : vector<8x128xf32>
    %217 = vector.broadcast %11 : vector<1x128xf32> to vector<8x128xf32>
    %218 = arith.addf %216, %217 : vector<8x128xf32>
    %219 = vector.extract_strided_slice %218 {offsets = [0, 0], sizes = [8, 32], strides = [1, 1]} : vector<8x128xf32> to vector<8x32xf32>
    %220 = vector.extract_strided_slice %218 {offsets = [0, 32], sizes = [8, 32], strides = [1, 1]} : vector<8x128xf32> to vector<8x32xf32>
    %221 = vector.extract_strided_slice %218 {offsets = [0, 64], sizes = [8, 32], strides = [1, 1]} : vector<8x128xf32> to vector<8x32xf32>
    %222 = vector.extract_strided_slice %218 {offsets = [0, 96], sizes = [8, 32], strides = [1, 1]} : vector<8x128xf32> to vector<8x32xf32>
    %223 = arith.mulf %220, %206 : vector<8x32xf32>
    %224 = arith.mulf %219, %221 : vector<8x32xf32>
    %225 = arith.addf %223, %224 : vector<8x32xf32>
    %226 = math.tanh %225 : vector<8x32xf32>
    %227 = arith.mulf %222, %226 : vector<8x32xf32>
    %228 = vector.extract_strided_slice %187 {offsets = [16, 0], sizes = [8, 128], strides = [1, 1]} : vector<64x128xf32> to vector<8x128xf32>
    %cst_43 = arith.constant dense<0.000000e+00> : vector<8x128xf32>
    %229 = tpu.matmul %227, %183, %cst_43 {dimension_numbers = #tpu.dot_dimension_numbers<[1], [0], [0], [1], [0, 0, 1, 1], [], []>} : vector<8x32xf32>, vector<32x128xf32>, vector<8x128xf32> -> vector<8x128xf32>
    %230 = arith.addf %228, %229 : vector<8x128xf32>
    %231 = vector.broadcast %8 : vector<1x128xf32> to vector<8x128xf32>
    %232 = arith.mulf %230, %231 : vector<8x128xf32>
    %233 = math.tanh %232 : vector<8x128xf32>
    %234 = vector.broadcast %8 : vector<1x128xf32> to vector<8x128xf32>
    %235 = arith.mulf %233, %234 : vector<8x128xf32>
    %236 = vector.broadcast %11 : vector<1x128xf32> to vector<8x128xf32>
    %237 = arith.addf %235, %236 : vector<8x128xf32>
    %238 = vector.extract_strided_slice %237 {offsets = [0, 0], sizes = [8, 32], strides = [1, 1]} : vector<8x128xf32> to vector<8x32xf32>
    %239 = vector.extract_strided_slice %237 {offsets = [0, 32], sizes = [8, 32], strides = [1, 1]} : vector<8x128xf32> to vector<8x32xf32>
    %240 = vector.extract_strided_slice %237 {offsets = [0, 64], sizes = [8, 32], strides = [1, 1]} : vector<8x128xf32> to vector<8x32xf32>
    %241 = vector.extract_strided_slice %237 {offsets = [0, 96], sizes = [8, 32], strides = [1, 1]} : vector<8x128xf32> to vector<8x32xf32>
    %242 = arith.mulf %239, %225 : vector<8x32xf32>
    %243 = arith.mulf %238, %240 : vector<8x32xf32>
    %244 = arith.addf %242, %243 : vector<8x32xf32>
    %245 = math.tanh %244 : vector<8x32xf32>
    %246 = arith.mulf %241, %245 : vector<8x32xf32>
    %247 = vector.extract_strided_slice %187 {offsets = [24, 0], sizes = [8, 128], strides = [1, 1]} : vector<64x128xf32> to vector<8x128xf32>
    %cst_44 = arith.constant dense<0.000000e+00> : vector<8x128xf32>
    %248 = tpu.matmul %246, %183, %cst_44 {dimension_numbers = #tpu.dot_dimension_numbers<[1], [0], [0], [1], [0, 0, 1, 1], [], []>} : vector<8x32xf32>, vector<32x128xf32>, vector<8x128xf32> -> vector<8x128xf32>
    %249 = arith.addf %247, %248 : vector<8x128xf32>
    %250 = vector.broadcast %8 : vector<1x128xf32> to vector<8x128xf32>
    %251 = arith.mulf %249, %250 : vector<8x128xf32>
    %252 = math.tanh %251 : vector<8x128xf32>
    %253 = vector.broadcast %8 : vector<1x128xf32> to vector<8x128xf32>
    %254 = arith.mulf %252, %253 : vector<8x128xf32>
    %255 = vector.broadcast %11 : vector<1x128xf32> to vector<8x128xf32>
    %256 = arith.addf %254, %255 : vector<8x128xf32>
    %257 = vector.extract_strided_slice %256 {offsets = [0, 0], sizes = [8, 32], strides = [1, 1]} : vector<8x128xf32> to vector<8x32xf32>
    %258 = vector.extract_strided_slice %256 {offsets = [0, 32], sizes = [8, 32], strides = [1, 1]} : vector<8x128xf32> to vector<8x32xf32>
    %259 = vector.extract_strided_slice %256 {offsets = [0, 64], sizes = [8, 32], strides = [1, 1]} : vector<8x128xf32> to vector<8x32xf32>
    %260 = vector.extract_strided_slice %256 {offsets = [0, 96], sizes = [8, 32], strides = [1, 1]} : vector<8x128xf32> to vector<8x32xf32>
    %261 = arith.mulf %258, %244 : vector<8x32xf32>
    %262 = arith.mulf %257, %259 : vector<8x32xf32>
    %263 = arith.addf %261, %262 : vector<8x32xf32>
    %264 = math.tanh %263 : vector<8x32xf32>
    %265 = arith.mulf %260, %264 : vector<8x32xf32>
    %266 = vector.extract_strided_slice %187 {offsets = [32, 0], sizes = [8, 128], strides = [1, 1]} : vector<64x128xf32> to vector<8x128xf32>
    %cst_45 = arith.constant dense<0.000000e+00> : vector<8x128xf32>
    %267 = tpu.matmul %265, %183, %cst_45 {dimension_numbers = #tpu.dot_dimension_numbers<[1], [0], [0], [1], [0, 0, 1, 1], [], []>} : vector<8x32xf32>, vector<32x128xf32>, vector<8x128xf32> -> vector<8x128xf32>
    %268 = arith.addf %266, %267 : vector<8x128xf32>
    %269 = vector.broadcast %8 : vector<1x128xf32> to vector<8x128xf32>
    %270 = arith.mulf %268, %269 : vector<8x128xf32>
    %271 = math.tanh %270 : vector<8x128xf32>
    %272 = vector.broadcast %8 : vector<1x128xf32> to vector<8x128xf32>
    %273 = arith.mulf %271, %272 : vector<8x128xf32>
    %274 = vector.broadcast %11 : vector<1x128xf32> to vector<8x128xf32>
    %275 = arith.addf %273, %274 : vector<8x128xf32>
    %276 = vector.extract_strided_slice %275 {offsets = [0, 0], sizes = [8, 32], strides = [1, 1]} : vector<8x128xf32> to vector<8x32xf32>
    %277 = vector.extract_strided_slice %275 {offsets = [0, 32], sizes = [8, 32], strides = [1, 1]} : vector<8x128xf32> to vector<8x32xf32>
    %278 = vector.extract_strided_slice %275 {offsets = [0, 64], sizes = [8, 32], strides = [1, 1]} : vector<8x128xf32> to vector<8x32xf32>
    %279 = vector.extract_strided_slice %275 {offsets = [0, 96], sizes = [8, 32], strides = [1, 1]} : vector<8x128xf32> to vector<8x32xf32>
    %280 = arith.mulf %277, %263 : vector<8x32xf32>
    %281 = arith.mulf %276, %278 : vector<8x32xf32>
    %282 = arith.addf %280, %281 : vector<8x32xf32>
    %283 = math.tanh %282 : vector<8x32xf32>
    %284 = arith.mulf %279, %283 : vector<8x32xf32>
    %285 = vector.extract_strided_slice %187 {offsets = [40, 0], sizes = [8, 128], strides = [1, 1]} : vector<64x128xf32> to vector<8x128xf32>
    %cst_46 = arith.constant dense<0.000000e+00> : vector<8x128xf32>
    %286 = tpu.matmul %284, %183, %cst_46 {dimension_numbers = #tpu.dot_dimension_numbers<[1], [0], [0], [1], [0, 0, 1, 1], [], []>} : vector<8x32xf32>, vector<32x128xf32>, vector<8x128xf32> -> vector<8x128xf32>
    %287 = arith.addf %285, %286 : vector<8x128xf32>
    %288 = vector.broadcast %8 : vector<1x128xf32> to vector<8x128xf32>
    %289 = arith.mulf %287, %288 : vector<8x128xf32>
    %290 = math.tanh %289 : vector<8x128xf32>
    %291 = vector.broadcast %8 : vector<1x128xf32> to vector<8x128xf32>
    %292 = arith.mulf %290, %291 : vector<8x128xf32>
    %293 = vector.broadcast %11 : vector<1x128xf32> to vector<8x128xf32>
    %294 = arith.addf %292, %293 : vector<8x128xf32>
    %295 = vector.extract_strided_slice %294 {offsets = [0, 0], sizes = [8, 32], strides = [1, 1]} : vector<8x128xf32> to vector<8x32xf32>
    %296 = vector.extract_strided_slice %294 {offsets = [0, 32], sizes = [8, 32], strides = [1, 1]} : vector<8x128xf32> to vector<8x32xf32>
    %297 = vector.extract_strided_slice %294 {offsets = [0, 64], sizes = [8, 32], strides = [1, 1]} : vector<8x128xf32> to vector<8x32xf32>
    %298 = vector.extract_strided_slice %294 {offsets = [0, 96], sizes = [8, 32], strides = [1, 1]} : vector<8x128xf32> to vector<8x32xf32>
    %299 = arith.mulf %296, %282 : vector<8x32xf32>
    %300 = arith.mulf %295, %297 : vector<8x32xf32>
    %301 = arith.addf %299, %300 : vector<8x32xf32>
    %302 = math.tanh %301 : vector<8x32xf32>
    %303 = arith.mulf %298, %302 : vector<8x32xf32>
    %304 = vector.extract_strided_slice %187 {offsets = [48, 0], sizes = [8, 128], strides = [1, 1]} : vector<64x128xf32> to vector<8x128xf32>
    %cst_47 = arith.constant dense<0.000000e+00> : vector<8x128xf32>
    %305 = tpu.matmul %303, %183, %cst_47 {dimension_numbers = #tpu.dot_dimension_numbers<[1], [0], [0], [1], [0, 0, 1, 1], [], []>} : vector<8x32xf32>, vector<32x128xf32>, vector<8x128xf32> -> vector<8x128xf32>
    %306 = arith.addf %304, %305 : vector<8x128xf32>
    %307 = vector.broadcast %8 : vector<1x128xf32> to vector<8x128xf32>
    %308 = arith.mulf %306, %307 : vector<8x128xf32>
    %309 = math.tanh %308 : vector<8x128xf32>
    %310 = vector.broadcast %8 : vector<1x128xf32> to vector<8x128xf32>
    %311 = arith.mulf %309, %310 : vector<8x128xf32>
    %312 = vector.broadcast %11 : vector<1x128xf32> to vector<8x128xf32>
    %313 = arith.addf %311, %312 : vector<8x128xf32>
    %314 = vector.extract_strided_slice %313 {offsets = [0, 0], sizes = [8, 32], strides = [1, 1]} : vector<8x128xf32> to vector<8x32xf32>
    %315 = vector.extract_strided_slice %313 {offsets = [0, 32], sizes = [8, 32], strides = [1, 1]} : vector<8x128xf32> to vector<8x32xf32>
    %316 = vector.extract_strided_slice %313 {offsets = [0, 64], sizes = [8, 32], strides = [1, 1]} : vector<8x128xf32> to vector<8x32xf32>
    %317 = vector.extract_strided_slice %313 {offsets = [0, 96], sizes = [8, 32], strides = [1, 1]} : vector<8x128xf32> to vector<8x32xf32>
    %318 = arith.mulf %315, %301 : vector<8x32xf32>
    %319 = arith.mulf %314, %316 : vector<8x32xf32>
    %320 = arith.addf %318, %319 : vector<8x32xf32>
    %321 = math.tanh %320 : vector<8x32xf32>
    %322 = arith.mulf %317, %321 : vector<8x32xf32>
    %323 = vector.extract_strided_slice %187 {offsets = [56, 0], sizes = [8, 128], strides = [1, 1]} : vector<64x128xf32> to vector<8x128xf32>
    %cst_48 = arith.constant dense<0.000000e+00> : vector<8x128xf32>
    %324 = tpu.matmul %322, %183, %cst_48 {dimension_numbers = #tpu.dot_dimension_numbers<[1], [0], [0], [1], [0, 0, 1, 1], [], []>} : vector<8x32xf32>, vector<32x128xf32>, vector<8x128xf32> -> vector<8x128xf32>
    %325 = arith.addf %323, %324 : vector<8x128xf32>
    %326 = vector.broadcast %8 : vector<1x128xf32> to vector<8x128xf32>
    %327 = arith.mulf %325, %326 : vector<8x128xf32>
    %328 = math.tanh %327 : vector<8x128xf32>
    %329 = vector.broadcast %8 : vector<1x128xf32> to vector<8x128xf32>
    %330 = arith.mulf %328, %329 : vector<8x128xf32>
    %331 = vector.broadcast %11 : vector<1x128xf32> to vector<8x128xf32>
    %332 = arith.addf %330, %331 : vector<8x128xf32>
    %333 = vector.extract_strided_slice %332 {offsets = [0, 0], sizes = [8, 32], strides = [1, 1]} : vector<8x128xf32> to vector<8x32xf32>
    %334 = vector.extract_strided_slice %332 {offsets = [0, 32], sizes = [8, 32], strides = [1, 1]} : vector<8x128xf32> to vector<8x32xf32>
    %335 = vector.extract_strided_slice %332 {offsets = [0, 64], sizes = [8, 32], strides = [1, 1]} : vector<8x128xf32> to vector<8x32xf32>
    %336 = vector.extract_strided_slice %332 {offsets = [0, 96], sizes = [8, 32], strides = [1, 1]} : vector<8x128xf32> to vector<8x32xf32>
    %337 = arith.mulf %334, %320 : vector<8x32xf32>
    %338 = arith.mulf %333, %335 : vector<8x32xf32>
    %339 = arith.addf %337, %338 : vector<8x32xf32>
    %340 = math.tanh %339 : vector<8x32xf32>
    %341 = arith.mulf %336, %340 : vector<8x32xf32>
    %c0_49 = arith.constant 0 : index
    %c0_50 = arith.constant 0 : index
    %342 = vector.load %arg9[%c0_49, %c0_50] : memref<8x32xf32, #tpu.memory_space<vmem>>, vector<8x32xf32>
    tpu.vector_store %arg9[%c0_49, %c0_50], %341 {strides = array<i32>} : memref<8x32xf32, #tpu.memory_space<vmem>>, vector<8x32xf32>,
    %c0_51 = arith.constant 0 : index
    %c0_52 = arith.constant 0 : index
    %343 = vector.load %arg7[%c0_51, %c0_52] : memref<32x8xf32, #tpu.memory_space<vmem>>, vector<32x8xf32>
    %cst_53 = arith.constant dense<0.000000e+00> : vector<8x8xf32>
    %344 = tpu.matmul %341, %343, %cst_53 {dimension_numbers = #tpu.dot_dimension_numbers<[1], [0], [0], [1], [0, 0, 1, 1], [], []>} : vector<8x32xf32>, vector<32x8xf32>, vector<8x8xf32> -> vector<8x8xf32>
    %c0_54 = arith.constant 0 : index
    %c0_55 = arith.constant 0 : index
    %345 = vector.load %arg8[%c0_54, %c0_55] : memref<1x8xf32, #tpu.memory_space<vmem>>, vector<1x8xf32>
    %346 = vector.broadcast %345 : vector<1x8xf32> to vector<8x8xf32>
    %347 = arith.addf %344, %346 : vector<8x8xf32>
    %c0_56 = arith.constant 0 : index
    %c0_57 = arith.constant 0 : index
    %348 = vector.load %arg10[%c0_56, %c0_57] : memref<8x8xf32, #tpu.memory_space<vmem>>, vector<8x8xf32>
    tpu.vector_store %arg10[%c0_56, %c0_57], %347 {strides = array<i32>} : memref<8x8xf32, #tpu.memory_space<vmem>>, vector<8x8xf32>,
    return
  }
}

</mosaic_0001>

<bundles_post_ra>
// kernel: tpu_custom_call.1
= control target key start
LH: loop header
LB: loop body
LE: loop exit
PB: predicated region body
PF: predicated region fallthrough
CT: control target
= control target key end

     0   :  { %16 = vsyncpa [#allocation4], 0  ;;  %s1670_s0 = inlined_call_operand.vmem [shape: f32[64,16], index: 0, kind: input, shape index: {}]   ;;  %s1671_s1 = inlined_call_operand.hbm [shape: f32[16,128], index: 1, kind: input, shape index: {}]   ;;  %s1672_s2 = inlined_call_operand.vmem [shape: f32[32,128], index: 2, kind: input, shape index: {}]   ;;  %s1673_s3 = inlined_call_operand.vmem [shape: f32[1,128], index: 3, kind: input, shape index: {}]   ;;  %s1674_s4 = inlined_call_operand.vmem [shape: f32[32,128], index: 4, kind: input, shape index: {}]   ;;  %s1675_s5 = inlined_call_operand.vmem [shape: f32[32,128], index: 5, kind: input, shape index: {}]   ;;  %s1676_s6 = inlined_call_operand.vmem [shape: f32[1,128], index: 6, kind: input, shape index: {}]   ;;  %s1677_s7 = inlined_call_operand.vmem [shape: f32[32,8], index: 7, kind: input, shape index: {}]   ;;  %s1678_s8 = inlined_call_operand.vmem [shape: f32[1,8], index: 8, kind: input, shape index: {}]   ;;  %s1679_s9 = inlined_call_operand.hbm [shape: f32[8,32], index: 9, kind: output, shape index: {0}]   ;;  %s1680_s10 = inlined_call_operand.hbm [shape: f32[8,8], index: 10, kind: output, shape index: {1}]  }
   0x1   :  { %17 = vsyncpa [#allocation5], 0 }
   0x2   :  { %18 = vsyncpa [#allocation8], 0  ;;  %s25_s15 = sshll.u32 %s1671_s1, 4  ;;  %s1248_s16 = smov [#allocation3]   ;;  %s26_s15 = int_to_ptr.hbm [resolvable:$true] %s25_s15 }
   0x3   :  { %s27_s17 = sshll.u32 %s1248_s16, 4  ;;  %s1249_s18 = smov 128   ;;  %s28_s17 = int_to_ptr.vmem [resolvable:$true] %s27_s17 }
   0x4   :  { %s1250_s19 = smov 8  }
   0x5   :  { %33 = dma.hbm_to_vmem [thread:$0]  %s26_s15, 256, %s28_s17, [#allocation4], %s1249_s18, %s1249_s18, %s1250_s19  }
   0x6   :  { %1242 = dma.done.wait [#allocation4], 256  }
   0x7   :  { %1243 = vsyncadd [#allocation4], 4294967040  ;;  %v1318_v0 = vld [vmem:[%s1672_s2 + $0x18] sm:$0xff]  ;;  %v68_v1 = vld [vmem:[#allocation3 + $0x8] sm:$0xff]  ;;  %vm77_vm0 = vcmask 130048   ;;  %v1251_v7 = vmov 0.0   ;;  %v52_v8 = vlaneseq }
   0x8   :  { %v1323_v2 = vld [vmem:[%s1672_s2 + $0x10] sm:$0xff]  ;;  %159 = vmatpush.msra.mxu1 %v1318_v0  ;;  %116 = vmatpush.msra.mxu0 %v68_v1  ;;  %v67_v3 = vld [vmem:[#allocation3] sm:$0xff]  ;;  %v1332_v5 = vld [vmem:[%s1672_s2 + $0x8] sm:$0xff]  ;;  %v1252_v13 = vmov 0.5   ;;  %s1254_s30 = smov 32   ;;  %vm143_vm4 = vcmask 261120  }
   0x9   :  { %v59_v4 = vld [vmem:[%s1670_s0] sm:$0xff]  ;;  %208 = vmatpush.msra.mxu2 %v1318_v0  ;;  %v53_v9 = vand.u32 127, %v52_v8  ;;  %v548_v30 = vld [vmem:[%s1674_s4 + $0x18] sm:$0xff]  ;;  %v547_v31 = vld [vmem:[%s1674_s4 + $0x10] sm:$0xff]  ;;  %s1037_s25 = sshll.u32 %s1679_s9, 4  ;;  %s1255_s26 = smov [#allocation6]   ;;  %s1038_s25 = int_to_ptr.hbm [resolvable:$true] %s1037_s25 }
   0xa   :  { %160 = vmatpush.msra.mxu1 %v1323_v2  ;;  %117 = vmatpush.msra.mxu0 %v67_v3  ;;  %v1340_v6 = vld [vmem:[%s1672_s2] sm:$0xff]  ;;  %v60_v32 = vld [vmem:[%s1670_s0 + $0x8] sm:$0xff]  ;;  %v61_v53 = vld [vmem:[%s1670_s0 + $0x10] sm:$0xff]  ;;  %s1035_s27 = sshll.u32 %s1255_s26, 4  ;;  %s1256_s2 = smov [#allocation7]   ;;  %vm1028_vm5 = vcmask 64512   ;;  %s1036_s27 = int_to_ptr.vmem [resolvable:$true] %s1035_s27 }
   0xb   :  { %1063 = vmatmul.msk.f32.vlgmr.msra.gmra.mxu0 %vm77_vm0, %v59_v4  ;;  %209 = vmatpush.msra.mxu2 %v1323_v2  ;;  %v1367_v10 = vld [vmem:[%s1673_s3] ss:$0 sm:$0xff]  ;;  %vm54_vm1 = vcmp.ge.s32.totalorder %v53_v9, 64  ;;  %vm55_vm2 = vcmp.lt.s32.totalorder %v53_v9, 96  ;;  %s1253_s3 = smov 64   ;;  %v546_v33 = vld [vmem:[%s1674_s4 + $0x8] sm:$0xff] }
   0xc   :  { %161 = vmatpush.msra.mxu1 %v1332_v5  ;;  %404 = vmatpush.msrb.mxu0 %v1318_v0  ;;  %vm56_vm3 = vmand %vm54_vm1, %vm55_vm2  ;;  %v545_v34 = vld [vmem:[%s1674_s4] sm:$0xff]  ;;  %s1048_s9 = sshll.u32 %s1680_s10, 4  ;;  %s1049_s9 = int_to_ptr.hbm [resolvable:$true] %s1048_s9 }
   0xd   :  { %210 = vmatpush.msra.mxu2 %v1332_v5  ;;  %v1370_v14 = vsel %vm56_vm3, 1.0, %v1252_v13  ;;  %v1373_v19 = vsel %vm56_vm3, 0.0, %v1252_v13  ;;  %593 = vmatpush.msra.mxu3 %v548_v30 }
   0xe   :  { %162 = vmatpush.msra.mxu1 %v1340_v6  ;;  %405 = vmatpush.msrb.mxu0 %v1323_v2 }
   0xf   :  { %163 = vmatmul.f32.vlgmr.msra.gmra.mxu1 %v1251_v7  ;;  %211 = vmatpush.msra.mxu2 %v1340_v6 }
  0x10   :  { %306 = vmatpush.msrb.mxu1 %v1318_v0  ;;  %406 = vmatpush.msrb.mxu0 %v1332_v5 }
  0x11   :  { %257 = vmatpush.msrb.mxu2 %v1318_v0  ;;  %594 = vmatpush.msra.mxu3 %v547_v31  ;;  %v63_v31 = vld [vmem:[%s1670_s0 + $0x20] sm:$0xff] }
  0x12   :  { %307 = vmatpush.msrb.mxu1 %v1323_v2  ;;  %407 = vmatpush.msrb.mxu0 %v1340_v6 }
  0x13   :  { %258 = vmatpush.msrb.mxu2 %v1323_v2  ;;  %1064 = vmatmul.msk.f32.gmra.mxu0 %vm77_vm0, %v60_v32 }
  0x14   :  { %308 = vmatpush.msrb.mxu1 %v1332_v5  ;;  %595 = vmatpush.msra.mxu3 %v546_v33 }
  0x15   :  { %259 = vmatpush.msrb.mxu2 %v1332_v5 }
  0x16   :  { %309 = vmatpush.msrb.mxu1 %v1340_v6  ;;  %596 = vmatpush.msra.mxu3 %v545_v34 }
  0x17   :  { %260 = vmatpush.msrb.mxu2 %v1340_v6 }
  0x18   :  { %453 = vmatpush.msra.mxu1 %v1318_v0 }
  0x1a   :  { %454 = vmatpush.msra.mxu1 %v1323_v2 }
  0x1b   :  { %1065 = vmatmul.msk.f32.gmra.mxu0 %vm77_vm0, %v61_v53 }
  0x1c   :  { %455 = vmatpush.msra.mxu1 %v1332_v5 }
  0x1e   :  { %456 = vmatpush.msra.mxu1 %v1340_v6 }
  0x88   :  { %v119_v11 = vpop.f32.mrf.mxu0 }
  0x89   :  { %v120_v12 = vadd.f32 %v1367_v10, %v119_v11 }
  0x8c   :  { %v164_v15 = vpop.f32.mrf.mxu1 }
  0x8d   :  { %v167_v16 = vadd.f32 %v164_v15, %v120_v12 }
  0x8f   :  { %v168_v17 = vmul.f32 %v167_v16, %v1370_v14 }
  0x90   :  { %v122_v37 = vpop.f32.mrf.mxu0 }
  0x91   :  { %1106 = vtanh.f32 %v168_v17  ;;  %v123_v38 = vadd.f32 %v1367_v10, %v122_v37 }
  0x97   :  { %v1107_v18 = vpop.eup %1106 }
  0x98   :  { %v170_v20 = vmul.f32 %v1107_v18, %v1370_v14  ;;  %v125_v56 = vpop.f32.mrf.mxu0 }
  0x99   :  { %v126_v57 = vadd.f32 %v1367_v10, %v125_v56 }
  0x9a   :  { %v171_v21 = vadd.f32 %v170_v20, %v1373_v19 }
  0x9c   :  { %174 = vrot.lane.b32.xlu0 %v171_v21, %s1253_s3  ;;  %v172_v24 = vmul.f32 0.0, %v171_v21 }
 0x10e   :  { %v175_v22 = vpop.permute.xlu0 %174 }
 0x10f   :  { %v177_v23 = vmul.f32 %v175_v22, %v171_v21 }
 0x111   :  { %179 = vrot.lane.b32.xlu0 %v177_v23, %s1254_s30 }
 0x183   :  { %v180_v25 = vpop.permute.xlu0 %179 }
 0x184   :  { %v182_v26 = vadd.f32 %v180_v25, %v172_v24 }
 0x186   :  { %1108 = vtanh.f32 %v182_v26 }
 0x18c   :  { %v1109_v27 = vpop.eup %1108 }
 0x18d   :  { %185 = vrot.lane.b32.xlu1 %v1109_v27, %s1253_s3 }
 0x1ff   :  { %v186_v28 = vpop.permute.xlu1 %185 }
 0x200   :  { %v188_v29 = vmul.f32 %v186_v28, %v171_v21 }
 0x202   :  { %190 = vrot.lane.b32.xlu1 %v188_v29, %s1254_s30 }
 0x274   :  { %v191_v35 = vpop.permute.xlu1 %190 }
 0x275   :  { %193 = vst.msk [vmem:[#allocation2] sm:$0xff] %vm143_vm4, %v191_v35  ;;  %1071 = vmatmul.msk.f32.vlgmr.msra.gmra.mxu2 %vm143_vm4, %v191_v35 }
 0x276   :  { %355 = vmatpush.msra.mxu2 %v1318_v0 }
 0x278   :  { %356 = vmatpush.msra.mxu2 %v1323_v2 }
 0x27a   :  { %357 = vmatpush.msra.mxu2 %v1332_v5 }
 0x27c   :  { %v537_v36 = vld [vmem:[#allocation2] sm:$0xff]  ;;  %358 = vmatpush.msra.mxu2 %v1340_v6 }
 0x27d   :  { %1078 = vmatmul.msk.f32.vlgmr.msra.gmra.mxu3 %vm143_vm4, %v537_v36 }
 0x2f8   :  { %v213_v39 = vpop.f32.mrf.mxu2 }
 0x2f9   :  { %v216_v40 = vadd.f32 %v213_v39, %v123_v38 }
 0x2fb   :  { %v217_v41 = vmul.f32 %v216_v40, %v1370_v14 }
 0x2fd   :  { %1110 = vtanh.f32 %v217_v41 }
 0x303   :  { %v1111_v42 = vpop.eup %1110 }
 0x304   :  { %v219_v43 = vmul.f32 %v1111_v42, %v1370_v14 }
 0x306   :  { %v220_v44 = vadd.f32 %v219_v43, %v1373_v19 }
 0x308   :  { %223 = vrot.lane.b32.xlu2 %v220_v44, %s1253_s3  ;;  %v221_v47 = vmul.f32 %v220_v44, %v182_v26 }
 0x362   :  { %v224_v45 = vpop.permute.xlu2 %223 }
 0x363   :  { %v226_v46 = vmul.f32 %v224_v45, %v220_v44 }
 0x365   :  { %228 = vrot.lane.b32.xlu2 %v226_v46, %s1254_s30 }
 0x3bf   :  { %v229_v48 = vpop.permute.xlu2 %228 }
 0x3c0   :  { %v231_v49 = vadd.f32 %v229_v48, %v221_v47  ;;  %v64_v48 = vld [vmem:[%s1670_s0 + $0x28] sm:$0xff] }
 0x3c2   :  { %1112 = vtanh.f32 %v231_v49 }
 0x3c8   :  { %v1113_v50 = vpop.eup %1112 }
 0x3c9   :  { %234 = vrot.lane.b32.xlu0 %v1113_v50, %s1253_s3  ;;  %v66_v50 = vld [vmem:[%s1670_s0 + $0x38] sm:$0xff] }
 0x43b   :  { %v235_v51 = vpop.permute.xlu0 %234 }
 0x43c   :  { %v237_v52 = vmul.f32 %v235_v51, %v220_v44 }
 0x43e   :  { %239 = vrot.lane.b32.xlu1 %v237_v52, %s1254_s30 }
 0x4b0   :  { %v240_v54 = vpop.permute.xlu1 %239 }
 0x4b1   :  { %242 = vst.msk [vmem:[#allocation2 + $0x8] sm:$0xff] %vm143_vm4, %v240_v54  ;;  %1072 = vmatmul.msk.f32.vlgmr.msrb.gmra.mxu2 %vm143_vm4, %v240_v54 }
 0x4b2   :  { %502 = vmatpush.msrb.mxu2 %v1318_v0 }
 0x4b4   :  { %503 = vmatpush.msrb.mxu2 %v1323_v2 }
 0x4b6   :  { %504 = vmatpush.msrb.mxu2 %v1332_v5 }
 0x4b8   :  { %v538_v55 = vld [vmem:[#allocation2 + $0x8] sm:$0xff]  ;;  %505 = vmatpush.msrb.mxu2 %v1340_v6  ;;  %v62_v6 = vld [vmem:[%s1670_s0 + $0x18] sm:$0xff] }
 0x4b9   :  { %1079 = vmatmul.msk.f32.gmra.mxu3 %vm143_vm4, %v538_v55  ;;  %1066 = vmatmul.msk.f32.gmra.mxu0 %vm77_vm0, %v62_v6 }
 0x4c1   :  { %1067 = vmatmul.msk.f32.gmra.mxu0 %vm77_vm0, %v63_v31 }
 0x4c9   :  { %1068 = vmatmul.msk.f32.gmra.mxu0 %vm77_vm0, %v64_v48 }
 0x534   :  { %v262_v58 = vpop.f32.mrf.mxu2 }
 0x535   :  { %v265_v59 = vadd.f32 %v262_v58, %v126_v57 }
 0x536   :  { %v128_v13 = vpop.f32.mrf.mxu0 }
 0x537   :  { %v266_v60 = vmul.f32 %v265_v59, %v1370_v14  ;;  %v129_v15 = vadd.f32 %v1367_v10, %v128_v13  ;;  %v1501_v13 = vld [vmem:[%s1675_s5 + $0x8] sm:$0xff] }
 0x539   :  { %1114 = vtanh.f32 %v266_v60 }
 0x53e   :  { %v131_v34 = vpop.f32.mrf.mxu0 }
 0x53f   :  { %v1115_v61 = vpop.eup %1114  ;;  %v132_v35 = vadd.f32 %v1367_v10, %v131_v34 }
 0x540   :  { %v268_v62 = vmul.f32 %v1115_v61, %v1370_v14 }
 0x542   :  { %v269_v63 = vadd.f32 %v268_v62, %v1373_v19 }
 0x544   :  { %272 = vrot.lane.b32.xlu2 %v269_v63, %s1253_s3  ;;  %v270_v2 = vmul.f32 %v269_v63, %v231_v49  ;;  %v65_v49 = vld [vmem:[%s1670_s0 + $0x30] sm:$0xff] }
 0x545   :  { %1069 = vmatmul.msk.f32.gmra.mxu0 %vm77_vm0, %v65_v49 }
 0x546   :  { %v134_v55 = vpop.f32.mrf.mxu0 }
 0x547   :  { %v135_v58 = vadd.f32 %v1367_v10, %v134_v55 }
 0x54d   :  { %1070 = vmatmul.msk.f32.gmra.mxu0 %vm77_vm0, %v66_v50 }
 0x59e   :  { %v273_v0 = vpop.permute.xlu2 %272 }
 0x59f   :  { %v275_v1 = vmul.f32 %v273_v0, %v269_v63 }
 0x5a1   :  { %277 = vrot.lane.b32.xlu0 %v275_v1, %s1254_s30 }
 0x5c2   :  { %v137_v56 = vpop.f32.mrf.mxu0 }
 0x5ca   :  { %v1476_v57 = vpop.f32.mrf.mxu0 }
 0x613   :  { %v278_v3 = vpop.permute.xlu0 %277 }
 0x614   :  { %v280_v4 = vadd.f32 %v278_v3, %v270_v2 }
 0x616   :  { %1116 = vtanh.f32 %v280_v4 }
 0x61c   :  { %v1117_v5 = vpop.eup %1116 }
 0x61d   :  { %283 = vrot.lane.b32.xlu1 %v1117_v5, %s1253_s3 }
 0x68f   :  { %v284_v8 = vpop.permute.xlu1 %283 }
 0x690   :  { %v286_v9 = vmul.f32 %v284_v8, %v269_v63 }
 0x692   :  { %288 = vrot.lane.b32.xlu2 %v286_v9, %s1254_s30 }
 0x6ec   :  { %v289_v11 = vpop.permute.xlu2 %288 }
 0x6ed   :  { %291 = vst.msk [vmem:[#allocation2 + $0x10] sm:$0xff] %vm143_vm4, %v289_v11  ;;  %1073 = vmatmul.msk.f32.vlgmr.msrb.gmra.mxu1 %vm143_vm4, %v289_v11  ;;  %v1489_v11 = vld [vmem:[%s1675_s5 + $0x18] sm:$0xff] }
 0x6ee   :  { %634 = vmatpush.msrb.mxu1 %v1489_v11 }
 0x6f4   :  { %v539_v12 = vld [vmem:[#allocation2 + $0x10] sm:$0xff] }
 0x6f5   :  { %1080 = vmatmul.msk.f32.gmra.mxu3 %vm143_vm4, %v539_v12  ;;  %v1494_v12 = vld [vmem:[%s1675_s5 + $0x10] sm:$0xff] }
 0x6f6   :  { %635 = vmatpush.msrb.mxu1 %v1494_v12 }
 0x6f8   :  { %636 = vmatpush.msrb.mxu1 %v1501_v13 }
 0x76a   :  { %v311_v16 = vpop.f32.mrf.mxu1 }
 0x76b   :  { %v314_v17 = vadd.f32 %v311_v16, %v129_v15  ;;  %v1508_v15 = vld [vmem:[%s1675_s5] sm:$0xff] }
 0x76c   :  { %637 = vmatpush.msrb.mxu1 %v1508_v15 }
 0x76d   :  { %v315_v18 = vmul.f32 %v314_v17, %v1370_v14 }
 0x76f   :  { %1118 = vtanh.f32 %v315_v18  ;;  %v138_v18 = vadd.f32 %v1367_v10, %v137_v56 }
 0x775   :  { %v1119_v20 = vpop.eup %1118 }
 0x776   :  { %v317_v21 = vmul.f32 %v1119_v20, %v1370_v14 }
 0x778   :  { %v318_v22 = vadd.f32 %v317_v21, %v1373_v19 }
 0x77a   :  { %321 = vrot.lane.b32.xlu0 %v318_v22, %s1253_s3  ;;  %v319_v25 = vmul.f32 %v318_v22, %v280_v4 }
 0x7ec   :  { %v322_v23 = vpop.permute.xlu0 %321 }
 0x7ed   :  { %v324_v24 = vmul.f32 %v322_v23, %v318_v22 }
 0x7ef   :  { %326 = vrot.lane.b32.xlu1 %v324_v24, %s1254_s30 }
 0x861   :  { %v327_v26 = vpop.permute.xlu1 %326 }
 0x862   :  { %v329_v27 = vadd.f32 %v327_v26, %v319_v25 }
 0x864   :  { %1120 = vtanh.f32 %v329_v27 }
 0x86a   :  { %v1121_v28 = vpop.eup %1120 }
 0x86b   :  { %332 = vrot.lane.b32.xlu2 %v1121_v28, %s1253_s3 }
 0x8c5   :  { %v333_v29 = vpop.permute.xlu2 %332 }
 0x8c6   :  { %v335_v30 = vmul.f32 %v333_v29, %v318_v22  ;;  %v1530_v22 = vld [vmem:[%s1676_s6] ss:$0 sm:$0xff] }
 0x8c8   :  { %337 = vrot.lane.b32.xlu0 %v335_v30, %s1254_s30 }
 0x93a   :  { %v338_v32 = vpop.permute.xlu0 %337 }
 0x93b   :  { %340 = vst.msk [vmem:[#allocation2 + $0x18] sm:$0xff] %vm143_vm4, %v338_v32  ;;  %1074 = vmatmul.msk.f32.vlgmr.msra.gmra.mxu2 %vm143_vm4, %v338_v32 }
 0x93c   :  { %681 = vmatpush.msra.mxu2 %v1489_v11 }
 0x93e   :  { %682 = vmatpush.msra.mxu2 %v1494_v12 }
 0x940   :  { %683 = vmatpush.msra.mxu2 %v1501_v13 }
 0x942   :  { %v540_v33 = vld [vmem:[#allocation2 + $0x18] sm:$0xff]  ;;  %684 = vmatpush.msra.mxu2 %v1508_v15 }
 0x943   :  { %1081 = vmatmul.msk.f32.gmra.mxu3 %vm143_vm4, %v540_v33 }
 0x9be   :  { %v360_v36 = vpop.f32.mrf.mxu2 }
 0x9bf   :  { %v363_v37 = vadd.f32 %v360_v36, %v132_v35 }
 0x9c1   :  { %v364_v38 = vmul.f32 %v363_v37, %v1370_v14 }
 0x9c3   :  { %1122 = vtanh.f32 %v364_v38 }
 0x9c9   :  { %v1123_v39 = vpop.eup %1122 }
 0x9ca   :  { %v366_v40 = vmul.f32 %v1123_v39, %v1370_v14 }
 0x9cc   :  { %v367_v41 = vadd.f32 %v366_v40, %v1373_v19 }
 0x9ce   :  { %370 = vrot.lane.b32.xlu1 %v367_v41, %s1253_s3  ;;  %v368_v44 = vmul.f32 %v367_v41, %v329_v27 }
 0xa40   :  { %v371_v42 = vpop.permute.xlu1 %370 }
 0xa41   :  { %v373_v43 = vmul.f32 %v371_v42, %v367_v41 }
 0xa43   :  { %375 = vrot.lane.b32.xlu2 %v373_v43, %s1254_s30 }
 0xa9d   :  { %v376_v45 = vpop.permute.xlu2 %375 }
 0xa9e   :  { %v378_v46 = vadd.f32 %v376_v45, %v368_v44 }
 0xaa0   :  { %1124 = vtanh.f32 %v378_v46 }
 0xaa6   :  { %v1125_v47 = vpop.eup %1124 }
 0xaa7   :  { %381 = vrot.lane.b32.xlu0 %v1125_v47, %s1253_s3 }
 0xb19   :  { %v382_v51 = vpop.permute.xlu0 %381 }
 0xb1a   :  { %v384_v52 = vmul.f32 %v382_v51, %v367_v41 }
 0xb1c   :  { %386 = vrot.lane.b32.xlu1 %v384_v52, %s1254_s30 }
 0xb8e   :  { %v387_v53 = vpop.permute.xlu1 %386 }
 0xb8f   :  { %389 = vst.msk [vmem:[#allocation2 + $0x20] sm:$0xff] %vm143_vm4, %v387_v53  ;;  %1075 = vmatmul.msk.f32.vlgmr.msrb.gmra.mxu0 %vm143_vm4, %v387_v53 }
 0xb96   :  { %v541_v54 = vld [vmem:[#allocation2 + $0x20] sm:$0xff] }
 0xb97   :  { %1082 = vmatmul.msk.f32.gmra.mxu3 %vm143_vm4, %v541_v54 }
 0xc0c   :  { %v409_v59 = vpop.f32.mrf.mxu0 }
 0xc0d   :  { %v412_v60 = vadd.f32 %v409_v59, %v135_v58 }
 0xc0f   :  { %v413_v61 = vmul.f32 %v412_v60, %v1370_v14 }
 0xc11   :  { %1126 = vtanh.f32 %v413_v61 }
 0xc17   :  { %v1127_v62 = vpop.eup %1126 }
 0xc18   :  { %v415_v63 = vmul.f32 %v1127_v62, %v1370_v14 }
 0xc1a   :  { %v416_v0 = vadd.f32 %v415_v63, %v1373_v19 }
 0xc1c   :  { %419 = vrot.lane.b32.xlu2 %v416_v0, %s1253_s3  ;;  %v417_v3 = vmul.f32 %v416_v0, %v378_v46 }
 0xc76   :  { %v420_v1 = vpop.permute.xlu2 %419 }
 0xc77   :  { %v422_v2 = vmul.f32 %v420_v1, %v416_v0 }
 0xc79   :  { %424 = vrot.lane.b32.xlu0 %v422_v2, %s1254_s30 }
 0xceb   :  { %v425_v4 = vpop.permute.xlu0 %424 }
 0xcec   :  { %v427_v5 = vadd.f32 %v425_v4, %v417_v3 }
 0xcee   :  { %1128 = vtanh.f32 %v427_v5 }
 0xcf4   :  { %v1129_v6 = vpop.eup %1128 }
 0xcf5   :  { %430 = vrot.lane.b32.xlu1 %v1129_v6, %s1253_s3 }
 0xd67   :  { %v431_v8 = vpop.permute.xlu1 %430 }
 0xd68   :  { %v433_v9 = vmul.f32 %v431_v8, %v416_v0 }
 0xd6a   :  { %435 = vrot.lane.b32.xlu2 %v433_v9, %s1254_s30 }
 0xdc4   :  { %v436_v16 = vpop.permute.xlu2 %435 }
 0xdc5   :  { %438 = vst.msk [vmem:[#allocation2 + $0x28] sm:$0xff] %vm143_vm4, %v436_v16  ;;  %1076 = vmatmul.msk.f32.vlgmr.msra.gmra.mxu1 %vm143_vm4, %v436_v16 }
 0xdc6   :  { %728 = vmatpush.msra.mxu1 %v1489_v11 }
 0xdc8   :  { %729 = vmatpush.msra.mxu1 %v1494_v12 }
 0xdca   :  { %730 = vmatpush.msra.mxu1 %v1501_v13 }
 0xdcc   :  { %v542_v17 = vld [vmem:[#allocation2 + $0x28] sm:$0xff]  ;;  %731 = vmatpush.msra.mxu1 %v1508_v15 }
 0xdcd   :  { %1083 = vmatmul.msk.f32.gmra.mxu3 %vm143_vm4, %v542_v17  ;;  %638 = vmatmul.f32.vlgmr.msrb.gmra.mxu1 %v1251_v7  ;;  %v598_v7 = vpop.f32.mrf.mxu3 }
 0xdce   :  { %822 = vmatpush.msrb.mxu1 %v1489_v11  ;;  %v599_v24 = vadd.f32 %v1530_v22, %v598_v7 }
 0xdd0   :  { %823 = vmatpush.msrb.mxu1 %v1494_v12 }
 0xdd2   :  { %824 = vmatpush.msrb.mxu1 %v1501_v13 }
 0xdd4   :  { %825 = vmatpush.msrb.mxu1 %v1508_v15 }
 0xdd5   :  { %v601_v54 = vpop.f32.mrf.mxu3 }
 0xdd6   :  { %v602_v55 = vadd.f32 %v1530_v22, %v601_v54 }
 0xddd   :  { %v604_v9 = vpop.f32.mrf.mxu3 }
 0xdde   :  { %v605_v16 = vadd.f32 %v1530_v22, %v604_v9 }
 0xe42   :  { %v458_v20 = vpop.f32.mrf.mxu1 }
 0xe43   :  { %v461_v21 = vadd.f32 %v458_v20, %v138_v18 }
 0xe45   :  { %v462_v23 = vmul.f32 %v461_v21, %v1370_v14 }
 0xe47   :  { %1130 = vtanh.f32 %v462_v23 }
 0xe4a   :  { %v639_v25 = vpop.f32.mrf.mxu1 }
 0xe4b   :  { %v642_v26 = vadd.f32 %v639_v25, %v599_v24 }
 0xe4d   :  { %v1131_v27 = vpop.eup %1130  ;;  %v643_v28 = vmul.f32 %v642_v26, %v1370_v14 }
 0xe4e   :  { %v464_v29 = vmul.f32 %v1131_v27, %v1370_v14 }
 0xe4f   :  { %1132 = vtanh.f32 %v643_v28 }
 0xe50   :  { %v465_v30 = vadd.f32 %v464_v29, %v1373_v19 }
 0xe52   :  { %468 = vrot.lane.b32.xlu0 %v465_v30, %s1253_s3  ;;  %v466_v38 = vmul.f32 %v465_v30, %v427_v5 }
 0xe55   :  { %v1133_v31 = vpop.eup %1132 }
 0xe56   :  { %v645_v32 = vmul.f32 %v1133_v31, %v1370_v14 }
 0xe58   :  { %v646_v33 = vadd.f32 %v645_v32, %v1373_v19 }
 0xe5a   :  { %649 = vrot.lane.b32.xlu1 %v646_v33, %s1253_s3  ;;  %v647_v42 = vmul.f32 0.0, %v646_v33 }
 0xec4   :  { %v469_v34 = vpop.permute.xlu0 %468 }
 0xec5   :  { %v471_v35 = vmul.f32 %v469_v34, %v465_v30 }
 0xec7   :  { %473 = vrot.lane.b32.xlu2 %v471_v35, %s1254_s30 }
 0xecc   :  { %v650_v36 = vpop.permute.xlu1 %649 }
 0xecd   :  { %v652_v37 = vmul.f32 %v650_v36, %v646_v33 }
 0xecf   :  { %654 = vrot.lane.b32.xlu0 %v652_v37, %s1254_s30 }
 0xf21   :  { %v474_v39 = vpop.permute.xlu2 %473 }
 0xf22   :  { %v1543_v40 = vadd.f32 %v474_v39, %v466_v38 }
 0xf24   :  { %1134 = vtanh.f32 %v1543_v40 }
 0xf2a   :  { %v1135_v41 = vpop.eup %1134 }
 0xf2b   :  { %479 = vrot.lane.b32.xlu1 %v1135_v41, %s1253_s3 }
 0xf41   :  { %v655_v43 = vpop.permute.xlu0 %654 }
 0xf42   :  { %v657_v44 = vadd.f32 %v655_v43, %v647_v42 }
 0xf44   :  { %1136 = vtanh.f32 %v657_v44 }
 0xf4a   :  { %v1137_v45 = vpop.eup %1136 }
 0xf4b   :  { %660 = vrot.lane.b32.xlu2 %v1137_v45, %s1253_s3 }
 0xf9d   :  { %v480_v46 = vpop.permute.xlu1 %479 }
 0xf9e   :  { %v482_v47 = vmul.f32 %v480_v46, %v465_v30 }
 0xfa0   :  { %484 = vrot.lane.b32.xlu0 %v482_v47, %s1254_s30 }
 0xfa5   :  { %v661_v48 = vpop.permute.xlu2 %660 }
 0xfa6   :  { %v663_v49 = vmul.f32 %v661_v48, %v646_v33  ;;  %v607_v33 = vpop.f32.mrf.mxu3 }
 0xfa7   :  { %v608_v34 = vadd.f32 %v1530_v22, %v607_v33 }
 0xfa8   :  { %665 = vrot.lane.b32.xlu1 %v663_v49, %s1254_s30 }
 0xfae   :  { %v610_v47 = vpop.f32.mrf.mxu3 }
 0xfaf   :  { %v611_v48 = vadd.f32 %v1530_v22, %v610_v47 }
0x1012   :  { %v485_v50 = vpop.permute.xlu0 %484 }
0x1013   :  { %487 = vst.msk [vmem:[#allocation2 + $0x30] sm:$0xff] %vm143_vm4, %v485_v50  ;;  %1077 = vmatmul.msk.f32.vlgmr.msrb.gmra.mxu2 %vm143_vm4, %v485_v50 }
0x1014   :  { %775 = vmatpush.msrb.mxu2 %v1489_v11 }
0x1016   :  { %776 = vmatpush.msrb.mxu2 %v1494_v12 }
0x1018   :  { %777 = vmatpush.msrb.mxu2 %v1501_v13 }
0x101a   :  { %v666_v51 = vpop.permute.xlu1 %665  ;;  %v543_v52 = vld [vmem:[#allocation2 + $0x30] sm:$0xff]  ;;  %778 = vmatpush.msrb.mxu2 %v1508_v15 }
0x101b   :  { %1084 = vmatmul.msk.f32.gmra.mxu3 %vm143_vm4, %v543_v52  ;;  %1086 = vmatmul.msk.f32.vlgmr.msra.gmra.mxu2 %vm143_vm4, %v666_v51 }
0x101c   :  { %869 = vmatpush.msra.mxu2 %v1489_v11 }
0x101e   :  { %870 = vmatpush.msra.mxu2 %v1494_v12 }
0x1020   :  { %871 = vmatpush.msra.mxu2 %v1501_v13 }
0x1022   :  { %872 = vmatpush.msra.mxu2 %v1508_v15 }
0x1096   :  { %v1562_v53 = vpop.f32.mrf.mxu2 }
0x109e   :  { %v686_v56 = vpop.f32.mrf.mxu2 }
0x109f   :  { %v689_v58 = vadd.f32 %v686_v56, %v602_v55 }
0x10a1   :  { %v690_v59 = vmul.f32 %v689_v58, %v1370_v14 }
0x10a3   :  { %1138 = vtanh.f32 %v690_v59 }
0x10a9   :  { %v1139_v60 = vpop.eup %1138 }
0x10aa   :  { %v692_v61 = vmul.f32 %v1139_v60, %v1370_v14 }
0x10ac   :  { %v693_v62 = vadd.f32 %v692_v61, %v1373_v19 }
0x10ae   :  { %696 = vrot.lane.b32.xlu2 %v693_v62, %s1253_s3  ;;  %v694_v1 = vmul.f32 %v693_v62, %v657_v44 }
0x1108   :  { %v697_v63 = vpop.permute.xlu2 %696 }
0x1109   :  { %v699_v0 = vmul.f32 %v697_v63, %v693_v62 }
0x110b   :  { %701 = vrot.lane.b32.xlu0 %v699_v0, %s1254_s30 }
0x117d   :  { %v702_v2 = vpop.permute.xlu0 %701 }
0x117e   :  { %v704_v3 = vadd.f32 %v702_v2, %v694_v1  ;;  %v613_v2 = vpop.f32.mrf.mxu3 }
0x1180   :  { %1140 = vtanh.f32 %v704_v3 }
0x1186   :  { %v1141_v4 = vpop.eup %1140 }
0x1187   :  { %707 = vrot.lane.b32.xlu1 %v1141_v4, %s1253_s3 }
0x11f9   :  { %v708_v5 = vpop.permute.xlu1 %707 }
0x11fa   :  { %v710_v6 = vmul.f32 %v708_v5, %v693_v62 }
0x11fc   :  { %712 = vrot.lane.b32.xlu2 %v710_v6, %s1254_s30 }
0x1256   :  { %v713_v8 = vpop.permute.xlu2 %712 }
0x1257   :  { %1087 = vmatmul.msk.f32.vlgmr.msra.gmra.mxu1 %vm143_vm4, %v713_v8 }
0x1258   :  { %916 = vmatpush.msra.mxu1 %v1489_v11 }
0x125a   :  { %917 = vmatpush.msra.mxu1 %v1494_v12 }
0x125c   :  { %918 = vmatpush.msra.mxu1 %v1501_v13 }
0x125e   :  { %919 = vmatpush.msra.mxu1 %v1508_v15 }
0x12d4   :  { %v733_v17 = vpop.f32.mrf.mxu1 }
0x12d5   :  { %v736_v18 = vadd.f32 %v733_v17, %v605_v16  ;;  %v141_v17 = vadd.f32 %v1367_v10, %v1476_v57 }
0x12d7   :  { %v737_v20 = vmul.f32 %v736_v18, %v1370_v14  ;;  %v510_v18 = vadd.f32 %v1562_v53, %v141_v17 }
0x12d9   :  { %1142 = vtanh.f32 %v737_v20  ;;  %v511_v20 = vmul.f32 %v510_v18, %v1370_v14 }
0x12df   :  { %v1143_v21 = vpop.eup %1142 }
0x12e0   :  { %v739_v23 = vmul.f32 %v1143_v21, %v1370_v14 }
0x12e2   :  { %v740_v7 = vadd.f32 %v739_v23, %v1373_v19 }
0x12e4   :  { %743 = vrot.lane.b32.xlu0 %v740_v7, %s1253_s3  ;;  %v741_v26 = vmul.f32 %v740_v7, %v704_v3  ;;  %v614_v3 = vadd.f32 %v1530_v22, %v613_v2 }
0x1356   :  { %v744_v24 = vpop.permute.xlu0 %743 }
0x1357   :  { %v746_v25 = vmul.f32 %v744_v24, %v740_v7 }
0x1359   :  { %748 = vrot.lane.b32.xlu1 %v746_v25, %s1254_s30 }
0x13cb   :  { %v749_v27 = vpop.permute.xlu1 %748 }
0x13cc   :  { %v751_v28 = vadd.f32 %v749_v27, %v741_v26 }
0x13ce   :  { %1144 = vtanh.f32 %v751_v28 }
0x13d4   :  { %v1145_v29 = vpop.eup %1144 }
0x13d5   :  { %754 = vrot.lane.b32.xlu2 %v1145_v29, %s1253_s3 }
0x142f   :  { %v755_v30 = vpop.permute.xlu2 %754 }
0x1430   :  { %v757_v31 = vmul.f32 %v755_v30, %v740_v7 }
0x1432   :  { %759 = vrot.lane.b32.xlu0 %v757_v31, %s1254_s30 }
0x14a4   :  { %v760_v32 = vpop.permute.xlu0 %759 }
0x14a5   :  { %1088 = vmatmul.msk.f32.vlgmr.msrb.gmra.mxu2 %vm143_vm4, %v760_v32  ;;  %v616_v32 = vpop.f32.mrf.mxu3 }
0x14a6   :  { %963 = vmatpush.msrb.mxu2 %v1489_v11  ;;  %v617_v33 = vadd.f32 %v1530_v22, %v616_v32 }
0x14a8   :  { %964 = vmatpush.msrb.mxu2 %v1494_v12 }
0x14aa   :  { %965 = vmatpush.msrb.mxu2 %v1501_v13 }
0x14ac   :  { %966 = vmatpush.msrb.mxu2 %v1508_v15 }
0x1528   :  { %v780_v35 = vpop.f32.mrf.mxu2 }
0x1529   :  { %v783_v36 = vadd.f32 %v780_v35, %v608_v34 }
0x152b   :  { %v784_v37 = vmul.f32 %v783_v36, %v1370_v14 }
0x152d   :  { %1146 = vtanh.f32 %v784_v37 }
0x1533   :  { %v1147_v38 = vpop.eup %1146 }
0x1534   :  { %v786_v39 = vmul.f32 %v1147_v38, %v1370_v14 }
0x1536   :  { %v787_v41 = vadd.f32 %v786_v39, %v1373_v19 }
0x1538   :  { %790 = vrot.lane.b32.xlu1 %v787_v41, %s1253_s3  ;;  %v788_v13 = vmul.f32 %v787_v41, %v751_v28 }
0x15aa   :  { %v791_v11 = vpop.permute.xlu1 %790 }
0x15ab   :  { %v793_v12 = vmul.f32 %v791_v11, %v787_v41 }
0x15ad   :  { %795 = vrot.lane.b32.xlu2 %v793_v12, %s1254_s30 }
0x1607   :  { %v796_v15 = vpop.permute.xlu2 %795 }
0x1608   :  { %v798_v42 = vadd.f32 %v796_v15, %v788_v13 }
0x160a   :  { %1148 = vtanh.f32 %v798_v42 }
0x1610   :  { %v1149_v43 = vpop.eup %1148 }
0x1611   :  { %801 = vrot.lane.b32.xlu0 %v1149_v43, %s1253_s3 }
0x1683   :  { %v802_v44 = vpop.permute.xlu0 %801 }
0x1684   :  { %v804_v45 = vmul.f32 %v802_v44, %v787_v41 }
0x1686   :  { %806 = vrot.lane.b32.xlu1 %v804_v45, %s1254_s30 }
0x16f8   :  { %v807_v46 = vpop.permute.xlu1 %806 }
0x16f9   :  { %1089 = vmatmul.msk.f32.vlgmr.msrb.gmra.mxu1 %vm143_vm4, %v807_v46 }
0x1776   :  { %v827_v49 = vpop.f32.mrf.mxu1 }
0x1777   :  { %v830_v50 = vadd.f32 %v827_v49, %v611_v48 }
0x1779   :  { %v831_v51 = vmul.f32 %v830_v50, %v1370_v14 }
0x177b   :  { %1150 = vtanh.f32 %v831_v51 }
0x1781   :  { %v1151_v52 = vpop.eup %1150 }
0x1782   :  { %v833_v54 = vmul.f32 %v1151_v52, %v1370_v14 }
0x1784   :  { %v834_v55 = vadd.f32 %v833_v54, %v1373_v19 }
0x1786   :  { %837 = vrot.lane.b32.xlu2 %v834_v55, %s1253_s3  ;;  %v835_v59 = vmul.f32 %v834_v55, %v798_v42 }
0x17e0   :  { %v838_v56 = vpop.permute.xlu2 %837 }
0x17e1   :  { %v840_v58 = vmul.f32 %v838_v56, %v834_v55 }
0x17e3   :  { %842 = vrot.lane.b32.xlu0 %v840_v58, %s1254_s30 }
0x1855   :  { %v843_v60 = vpop.permute.xlu0 %842 }
0x1856   :  { %v845_v61 = vadd.f32 %v843_v60, %v835_v59 }
0x1858   :  { %1152 = vtanh.f32 %v845_v61 }
0x185e   :  { %v1153_v62 = vpop.eup %1152 }
0x185f   :  { %848 = vrot.lane.b32.xlu1 %v1153_v62, %s1253_s3 }
0x18d1   :  { %v849_v63 = vpop.permute.xlu1 %848 }
0x18d2   :  { %v851_v0 = vmul.f32 %v849_v63, %v834_v55 }
0x18d4   :  { %853 = vrot.lane.b32.xlu2 %v851_v0, %s1254_s30 }
0x192e   :  { %v854_v1 = vpop.permute.xlu2 %853 }
0x192f   :  { %1090 = vmatmul.msk.f32.vlgmr.msra.gmra.mxu2 %vm143_vm4, %v854_v1 }
0x19b2   :  { %v874_v4 = vpop.f32.mrf.mxu2 }
0x19b3   :  { %v877_v5 = vadd.f32 %v874_v4, %v614_v3  ;;  %v1001_v4 = vld [vmem:[%s1677_s7 + $0x18] sm:$0xff] }
0x19b4   :  { %1020 = vmatpush.msrb.mxu1 %v1001_v4 }
0x19b5   :  { %v878_v6 = vmul.f32 %v877_v5, %v1370_v14  ;;  %v998_v5 = vld [vmem:[%s1677_s7] sm:$0xff] }
0x19b7   :  { %1154 = vtanh.f32 %v878_v6 }
0x19b8   :  { %1156 = vtanh.f32 %v511_v20 }
0x19bd   :  { %v1155_v8 = vpop.eup %1154 }
0x19be   :  { %v880_v9 = vmul.f32 %v1155_v8, %v1370_v14  ;;  %v1157_v7 = vpop.eup %1156 }
0x19bf   :  { %v513_v24 = vmul.f32 %v1157_v7, %v1370_v14 }
0x19c0   :  { %v881_v16 = vadd.f32 %v880_v9, %v1373_v19 }
0x19c1   :  { %v514_v25 = vadd.f32 %v513_v24, %v1373_v19 }
0x19c2   :  { %884 = vrot.lane.b32.xlu0 %v881_v16, %s1253_s3  ;;  %v882_v26 = vmul.f32 %v881_v16, %v845_v61 }
0x19c3   :  { %v515_v39 = vmul.f32 %v514_v25, %v1543_v40 }
0x1a34   :  { %v885_v21 = vpop.permute.xlu0 %884 }
0x1a35   :  { %v887_v23 = vmul.f32 %v885_v21, %v881_v16 }
0x1a37   :  { %889 = vrot.lane.b32.xlu1 %v887_v23, %s1254_s30 }
0x1a3f   :  { %517 = vrot.lane.b32.xlu1 %v514_v25, %s1253_s3 }
0x1aa9   :  { %v890_v27 = vpop.permute.xlu1 %889 }
0x1aaa   :  { %v892_v28 = vadd.f32 %v890_v27, %v882_v26 }
0x1aac   :  { %1158 = vtanh.f32 %v892_v28 }
0x1ab1   :  { %v518_v29 = vpop.permute.xlu1 %517 }
0x1ab2   :  { %v1159_v10 = vpop.eup %1158  ;;  %v520_v30 = vmul.f32 %v518_v29, %v514_v25 }
0x1ab3   :  { %895 = vrot.lane.b32.xlu2 %v1159_v10, %s1253_s3 }
0x1b0d   :  { %v896_v57 = vpop.permute.xlu2 %895 }
0x1b0e   :  { %v898_v53 = vmul.f32 %v896_v57, %v881_v16  ;;  %v1105_v16 = vld [vmem:[%s1678_s8] ss:$0 sm:$0xff] }
0x1b10   :  { %900 = vrot.lane.b32.xlu0 %v898_v53, %s1254_s30 }
0x1b18   :  { %522 = vrot.lane.b32.xlu0 %v520_v30, %s1254_s30 }
0x1b82   :  { %v901_v31 = vpop.permute.xlu0 %900 }
0x1b83   :  { %1091 = vmatmul.msk.f32.vlgmr.msra.gmra.mxu1 %vm143_vm4, %v901_v31 }
0x1b8a   :  { %v523_v37 = vpop.permute.xlu0 %522 }
0x1b8b   :  { %v525_v11 = vadd.f32 %v523_v37, %v515_v39 }
0x1c00   :  { %v921_v34 = vpop.f32.mrf.mxu1 }
0x1c01   :  { %v924_v35 = vadd.f32 %v921_v34, %v617_v33 }
0x1c03   :  { %v925_v36 = vmul.f32 %v924_v35, %v1370_v14 }
0x1c05   :  { %1160 = vtanh.f32 %v925_v36 }
0x1c06   :  { %1162 = vtanh.f32 %v525_v11 }
0x1c0b   :  { %v1161_v38 = vpop.eup %1160 }
0x1c0c   :  { %v927_v41 = vmul.f32 %v1161_v38, %v1370_v14  ;;  %v1163_v13 = vpop.eup %1162 }
0x1c0e   :  { %v928_v12 = vadd.f32 %v927_v41, %v1373_v19 }
0x1c10   :  { %931 = vrot.lane.b32.xlu2 %v928_v12, %s1253_s3  ;;  %v929_v40 = vmul.f32 %v928_v12, %v892_v28 }
0x1c18   :  { %528 = vrot.lane.b32.xlu2 %v1163_v13, %s1253_s3 }
0x1c6a   :  { %v932_v15 = vpop.permute.xlu2 %931 }
0x1c6b   :  { %v934_v42 = vmul.f32 %v932_v15, %v928_v12 }
0x1c6d   :  { %936 = vrot.lane.b32.xlu1 %v934_v42, %s1254_s30 }
0x1c72   :  { %v529_v43 = vpop.permute.xlu2 %528 }
0x1c73   :  { %v531_v44 = vmul.f32 %v529_v43, %v514_v25 }
0x1c75   :  { %533 = vrot.lane.b32.xlu1 %v531_v44, %s1254_s30 }
0x1cdf   :  { %v937_v45 = vpop.permute.xlu1 %936 }
0x1ce0   :  { %v939_v46 = vadd.f32 %v937_v45, %v929_v40 }
0x1ce2   :  { %1164 = vtanh.f32 %v939_v46 }
0x1ce7   :  { %v534_v47 = vpop.permute.xlu1 %533 }
0x1ce8   :  { %v1165_v48 = vpop.eup %1164  ;;  %536 = vst.msk [vmem:[#allocation2 + $0x38] sm:$0xff] %vm143_vm4, %v534_v47 }
0x1ce9   :  { %942 = vrot.lane.b32.xlu0 %v1165_v48, %s1253_s3 }
0x1cef   :  { %v544_v49 = vld [vmem:[#allocation2 + $0x38] sm:$0xff] }
0x1cf0   :  { %1085 = vmatmul.msk.f32.gmra.mxu3 %vm143_vm4, %v544_v49 }
0x1d5b   :  { %v943_v50 = vpop.permute.xlu0 %942 }
0x1d5c   :  { %v945_v51 = vmul.f32 %v943_v50, %v928_v12 }
0x1d5e   :  { %947 = vrot.lane.b32.xlu2 %v945_v51, %s1254_s30 }
0x1d73   :  { %v619_v54 = vpop.f32.mrf.mxu3 }
0x1d74   :  { %v620_v55 = vadd.f32 %v1530_v22, %v619_v54 }
0x1db8   :  { %v948_v52 = vpop.permute.xlu2 %947 }
0x1db9   :  { %1092 = vmatmul.msk.f32.vlgmr.msrb.gmra.mxu2 %vm143_vm4, %v948_v52 }
0x1e3c   :  { %v968_v56 = vpop.f32.mrf.mxu2 }
0x1e3d   :  { %v971_v58 = vadd.f32 %v968_v56, %v620_v55 }
0x1e3f   :  { %v972_v59 = vmul.f32 %v971_v58, %v1370_v14 }
0x1e41   :  { %1166 = vtanh.f32 %v972_v59 }
0x1e47   :  { %v1167_v60 = vpop.eup %1166 }
0x1e48   :  { %v974_v61 = vmul.f32 %v1167_v60, %v1370_v14  ;;  %v1000_v14 = vld [vmem:[%s1677_s7 + $0x10] sm:$0xff] }
0x1e49   :  { %1021 = vmatpush.msrb.mxu1 %v1000_v14 }
0x1e4a   :  { %v975_v62 = vadd.f32 %v974_v61, %v1373_v19  ;;  %v999_v19 = vld [vmem:[%s1677_s7 + $0x8] sm:$0xff] }
0x1e4b   :  { %1022 = vmatpush.msrb.mxu1 %v999_v19 }
0x1e4c   :  { %978 = vrot.lane.b32.xlu0 %v975_v62, %s1253_s3  ;;  %v976_v1 = vmul.f32 %v975_v62, %v939_v46 }
0x1e4d   :  { %1023 = vmatpush.msrb.mxu1 %v998_v5 }
0x1ebe   :  { %v979_v63 = vpop.permute.xlu0 %978 }
0x1ebf   :  { %v981_v0 = vmul.f32 %v979_v63, %v975_v62 }
0x1ec1   :  { %983 = vrot.lane.b32.xlu1 %v981_v0, %s1254_s30 }
0x1f33   :  { %v984_v2 = vpop.permute.xlu1 %983 }
0x1f34   :  { %v986_v3 = vadd.f32 %v984_v2, %v976_v1 }
0x1f36   :  { %1168 = vtanh.f32 %v986_v3 }
0x1f3c   :  { %v1169_v22 = vpop.eup %1168 }
0x1f3d   :  { %989 = vrot.lane.b32.xlu2 %v1169_v22, %s1253_s3 }
0x1f97   :  { %v990_v6 = vpop.permute.xlu2 %989 }
0x1f98   :  { %v992_v8 = vmul.f32 %v990_v6, %v975_v62 }
0x1f9a   :  { %994 = vrot.lane.b32.xlu0 %v992_v8, %s1254_s30  ;;  %s1046_s30 = sshll.u32 %s1256_s2, 4  ;;  %s1047_s30 = int_to_ptr.vmem [resolvable:$true] %s1046_s30 }
0x200c   :  { %v995_v9 = vpop.permute.xlu0 %994 }
0x200d   :  { %997 = vst.msk [vmem:[#allocation6] sm:$0xff] %vm143_vm4, %v995_v9  ;;  %1093 = vmatmul.msk.f32.vlgmr.msrb.gmra.mxu1 %vm143_vm4, %v995_v9 }
0x200e   :  { %1040 = dma.vmem_to_hbm [thread:$0]  %s1036_s27, 128, %s1038_s25, [#allocation5]  }
0x208a   :  { %v1025_v17 = vpop.f32.mrf.mxu1 }
0x208b   :  { %v1026_v18 = vadd.f32 %v1105_v16, %v1025_v17 }
0x208d   :  { %1029 = vst.msk [vmem:[#allocation7] sm:$0xff] %vm1028_vm5, %v1026_v18 }
0x208e   :  { %1051 = dma.vmem_to_hbm [thread:$0]  %s1047_s30, 128, %s1049_s9, [#allocation8]  }
0x208f   :  { %1244 = dma.done.wait [#allocation5], 128  }
0x2090   :  { %1245 = vsyncadd [#allocation5], 4294967168 }
0x2091   :  { %1246 = dma.done.wait [#allocation8], 128  }
0x2092   :  { %1247 = vsyncadd [#allocation8], 4294967168 }
0x2093   :  { %1060 = vsyncpa [#allocation4], 1 }
0x2094   :  { %1061 = vsyncpa [#allocation5], 1 }
0x2095   :  { %1062 = vsyncpa [#allocation8], 1 }

</bundles_post_ra>
